<compile_context>
chip_gen: v5e
topology: v5e:2x2
jax: 0.10.0
libtpu: 0.0.40
codegen_flags: <defaults>
</compile_context>

<pallas_src>
import functools

import jax
import jax.numpy as jnp
import numpy as np
from jax import lax
from jax.experimental import pallas as pl
from jax.experimental.pallas import tpu as pltpu


PARAM_ORDER = [
    "ln1_g", "ln1_b",
    "wq", "bq", "wk", "bk", "wv", "bv", "wo", "bo",
    "ln2_g", "ln2_b",
    "w1", "b1", "w2", "b2",
]


# ----------------------------------------------------------------------------
# Pallas kernels
# ----------------------------------------------------------------------------
def _layer_norm(x, gamma, beta, eps=1e-5):
    mu = jnp.mean(x, axis=-1, keepdims=True)
    var = jnp.mean((x - mu) ** 2, axis=-1, keepdims=True)
    return (x - mu) * lax.rsqrt(var + eps) * gamma + beta


def encoder_stack_kernel(
    x_ref, kv_ref,
    ln1_g_ref, ln1_b_ref,
    wq_ref, bq_ref, wk_ref, bk_ref, wv_ref, bv_ref, wo_ref, bo_ref,
    ln2_g_ref, ln2_b_ref,
    w1_ref, b1_ref, w2_ref, b2_ref,
    o_ref,
    *, n_heads,
):
    """One pre-LN transformer block; grid axis 1 iterates over layers while the
    residual stream stays resident in the (revisited) output block."""
    layer = pl.program_id(1)

    # Layer 0: load the embedded tokens (bf16) into the resident f32 stream.
    @pl.when(layer == 0)
    def _():
        o_ref[...] = x_ref[...].astype(o_ref.dtype)

    bt, seq, width = o_ref.shape
    dh = width // n_heads
    rows = bt * seq

    x = o_ref[...].astype(jnp.float32).reshape(rows, width)     # (Bt*S, W)

    # Additive padding-mask bias, computed ONCE per layer (hoisted).
    # TODO(synk): this assumes a key-padding mask with identical rows (as
    # implied by the module's EOT selection `sum(mask[:,0]) - 1`); a causal
    # mask would require shipping the full (B, S, S) mask instead.
    neg_bias = jnp.where(kv_ref[...] == 0.0, jnp.float32(-1e9),
                         jnp.float32(0.0))                       # (Bt, 1, S)

    # ------------------- multi-head self-attention (pre-LN) -------------------
    h = _layer_norm(x, ln1_g_ref[0], ln1_b_ref[0])
    hb = h.astype(jnp.bfloat16)

    inv_scale = jnp.float32(1.0 / float(np.sqrt(dh)))

    # Full-width QKV projections (full MXU output width, f32 accumulate).
    q = jnp.dot(hb, wq_ref[0], preferred_element_type=jnp.float32) + bq_ref[0]
    k = jnp.dot(hb, wk_ref[0], preferred_element_type=jnp.float32) + bk_ref[0]
    v = jnp.dot(hb, wv_ref[0], preferred_element_type=jnp.float32) + bv_ref[0]

    qb = (q * inv_scale).astype(jnp.bfloat16).reshape(bt, seq, width)
    kb = k.astype(jnp.bfloat16).reshape(bt, seq, width)
    vb = v.astype(jnp.bfloat16).reshape(bt, seq, width)

    # Per-head score/softmax/context (Dh-contractions are inherent to MHA);
    # no weights and no accumulator inside this loop.
    ctx_heads = []
    for head in range(n_heads):
        sl = slice(head * dh, (head + 1) * dh)
        scores = jnp.einsum("bqd,bkd->bqk", qb[:, :, sl], kb[:, :, sl],
                            preferred_element_type=jnp.float32)
        scores = scores + neg_bias                               # (Bt, S, S)
        smax = jnp.max(scores, axis=-1, keepdims=True)
        p = jnp.exp(scores - smax)
        denom = jnp.sum(p, axis=-1, keepdims=True)
        probs = p * pl.reciprocal(denom, approx=True)            # EUP, not VALU
        ctx_heads.append(
            jnp.einsum("bqk,bkd->bqd", probs.astype(jnp.bfloat16),
                       vb[:, :, sl], preferred_element_type=jnp.float32))

    ctx = jnp.concatenate(ctx_heads, axis=-1)                    # (Bt, S, W)
    # Single full-width output projection (K = W, full MXU depth).
    attn = jnp.dot(ctx.reshape(rows, width).astype(jnp.bfloat16), wo_ref[0],
                   preferred_element_type=jnp.float32) + bo_ref[0]
    x = x + attn

    # ------------------------------- MLP (pre-LN) -----------------------------
    h2 = _layer_norm(x, ln2_g_ref[0], ln2_b_ref[0]).astype(jnp.bfloat16)
    m1 = jnp.dot(h2, w1_ref[0], preferred_element_type=jnp.float32) + b1_ref[0]
    # TODO(synk): the reference transformer's activation is not shown; tanh-GELU
    # is used here (torch nn.GELU default is exact erf, OpenAI CLIP uses
    # QuickGELU) -- swap if the reference differs.
    m1 = jax.nn.gelu(m1).astype(jnp.bfloat16)
    m2 = jnp.dot(m1, w2_ref[0], preferred_element_type=jnp.float32) + b2_ref[0]
    x = x + m2

    o_ref[...] = x.reshape(bt, seq, width).astype(o_ref.dtype)


def project_norm_kernel(x_ref, proj_ref, o_ref):
    """x @ projection (bf16 operands, f32 accumulate), then L2-normalize."""
    y = jnp.dot(x_ref[...].astype(jnp.bfloat16), proj_ref[...],
                preferred_element_type=jnp.float32)
    # Matches torch `x /= x.norm(...)` (no epsilon).
    o_ref[...] = (y * lax.rsqrt(jnp.sum(y * y, axis=-1, keepdims=True))
                  ).astype(o_ref.dtype)


# ----------------------------------------------------------------------------
# Wrappers
# ----------------------------------------------------------------------------
def _pick_batch_tile(B, S, row_cap=1024):
    """Largest divisor of B with batch_tile*S <= row_cap; prefer tiles that
    leave >= 2 steps on the parallel batch axis (v7x has 2 TensorCores)."""
    candidates = [d for d in range(1, B + 1) if B % d == 0 and d * S <= row_cap]
    if not candidates:
        return 1
    multi = [d for d in candidates if B // d >= 2]
    return max(multi) if multi else max(candidates)


def encoder_stack(x, key_valid, stacked, n_heads, batch_tile=None):
    B, S, W = x.shape
    L = stacked["ln1_g"].shape[0]
    mlp = stacked["w1"].shape[-1]

    if batch_tile is None:
        batch_tile = _pick_batch_tile(B, S)
    assert B % batch_tile == 0
    rows = batch_tile * S

    param_arrays = [stacked[name] for name in PARAM_ORDER]

    in_specs = [
        pl.BlockSpec((batch_tile, S, W), lambda b, l: (b, 0, 0)),   # tokens (bf16)
        pl.BlockSpec((batch_tile, 1, S), lambda b, l: (b, 0, 0)),   # key validity
    ]
    for a in param_arrays:
        blk = (1,) + a.shape[1:]
        nz = a.ndim - 1
        in_specs.append(pl.BlockSpec(blk, lambda b, l, nz=nz: (l,) + (0,) * nz))

    # VMEM budget: double-buffered per-layer weights + double-buffered token /
    # mask inputs + resident residual + in-kernel f32 intermediates (q/k/v/h/
    # ctx/attn ~ 10x (rows,W) f32, scores ~ 2x (Bt,S,S) f32, GELU activation
    # (rows, mlp) f32 + bf16).  Capped at 50 MiB so it also fits v7x's 64 MiB
    # physical VMEM with headroom for compiler scratch.
    param_block_bytes = sum(
        int(np.prod(a.shape[1:])) * a.dtype.itemsize for a in param_arrays)
    x_in_bytes = rows * W * 2
    kv_bytes = batch_tile * S * 4
    out_bytes = rows * W * 4
    interm_bytes = (rows * W * 4 * 10
                    + batch_tile * S * S * 4 * 2
                    + rows * mlp * 6)
    vmem_limit = int(np.clip(
        2 * param_block_bytes + 2 * (x_in_bytes + kv_bytes) + 2 * out_bytes
        + interm_bytes + (2 << 20),
        16 << 20, 50 << 20))

    return pl.pallas_call(
        functools.partial(encoder_stack_kernel, n_heads=n_heads),
        out_shape=jax.ShapeDtypeStruct((B, S, W), jnp.float32),
        grid=(B // batch_tile, L),
        in_specs=in_specs,
        # Same block index across the layer axis -> residual stream stays
        # resident in VMEM; written back to HBM only when the batch tile changes.
        out_specs=pl.BlockSpec((batch_tile, S, W), lambda b, l: (b, 0, 0)),
        compiler_params=pltpu.CompilerParams(
            dimension_semantics=("parallel", "arbitrary"),
            vmem_limit_bytes=vmem_limit,
        ),
    )(x, key_valid, *param_arrays)


def project_and_normalize(x_last, projection):
    B, W = x_last.shape
    E = projection.shape[1]
    return pl.pallas_call(
        project_norm_kernel,
        out_shape=jax.ShapeDtypeStruct((B, E), jnp.float32),
        in_specs=[
            pl.BlockSpec((B, W), lambda: (0, 0)),
            pl.BlockSpec((W, E), lambda: (0, 0)),
        ],
        out_specs=pl.BlockSpec((B, E), lambda: (0, 0)),
    )(x_last, projection)


def sinusoidal_pe(S, W):
    # TODO(synk): transformer.PositionalEmbedding internals are not shown;
    # sinusoidal PE is assumed (swap for a learned table if the reference uses one).
    pos = np.arange(S, dtype=np.float32)[:, None]
    i = np.arange(W, dtype=np.float32)[None, :]
    angle = pos / np.power(10000.0, (2.0 * np.floor(i / 2.0)) / W)
    pe = np.zeros((S, W), dtype=np.float32)
    pe[:, 0::2] = np.sin(angle[:, 0::2])
    pe[:, 1::2] = np.cos(angle[:, 1::2])
    return jnp.asarray(pe)


def init_params(key, vocab, width, n_layers, n_heads, emb_dim, mlp_ratio=4):
    assert width % n_heads == 0
    mlp = width * mlp_ratio
    keys = jax.random.split(key, 2 + n_layers)
    params = {
        "embedding": jax.random.normal(keys[0], (vocab, width), jnp.float32) * 0.02,
        "projection": (jax.random.normal(keys[1], (width, emb_dim), jnp.float32)
                       * 0.02).astype(jnp.bfloat16),
    }

    def lin(k, din, dout):
        return jax.random.normal(k, (din, dout), jnp.float32) / np.sqrt(din)

    per_layer = []
    for l in range(n_layers):
        ks = jax.random.split(keys[2 + l], 6)
        per_layer.append(dict(
            ln1_g=jnp.ones((1, width), jnp.float32),
            ln1_b=jnp.zeros((1, width), jnp.float32),
            # Full-width (W, W) weights; heads are split by reshape in-kernel
            # (lane order [head0 Dh, head1 Dh, ...] matches standard splitting).
            wq=lin(ks[0], width, width).astype(jnp.bfloat16),
            wk=lin(ks[1], width, width).astype(jnp.bfloat16),
            wv=lin(ks[2], width, width).astype(jnp.bfloat16),
            wo=lin(ks[3], width, width).astype(jnp.bfloat16),
            bq=jnp.zeros((1, width), jnp.float32),
            bk=jnp.zeros((1, width), jnp.float32),
            bv=jnp.zeros((1, width), jnp.float32),
            bo=jnp.zeros((1, width), jnp.float32),
            ln2_g=jnp.ones((1, width), jnp.float32),
            ln2_b=jnp.zeros((1, width), jnp.float32),
            w1=lin(ks[4], width, mlp).astype(jnp.bfloat16),
            b1=jnp.zeros((1, mlp), jnp.float32),
            w2=lin(ks[5], mlp, width).astype(jnp.bfloat16),
            b2=jnp.zeros((1, width), jnp.float32),
        ))
    params["stacked"] = {
        name: jnp.stack([lp[name] for lp in per_layer], axis=0)
        for name in PARAM_ORDER
    }
    return params


def text_encoder_forward(text, mask, params, n_heads):
    B, S = text.shape
    W = params["embedding"].shape[1]

    # Embedding lookup + positional embedding (plain-JAX glue), shipped bf16.
    x = jnp.take(params["embedding"], text, axis=0)              # (B, S, W)
    x = (x + sinusoidal_pe(S, W)[None]).astype(jnp.bfloat16)

    # Key-padding validity per sequence; avoids shipping the (B, S, S) mask.
    key_valid = mask[:, 0, :].astype(jnp.float32).reshape(B, 1, S)

    # Pad S to a multiple of 8 for dense sublane tiles (ideally 128 for large S);
    # padded keys are masked out, padded query rows are never gathered.
    S_pad = ((S + 7) // 8) * 8
    if S_pad != S:
        x = jnp.pad(x, ((0, 0), (0, S_pad - S), (0, 0)))
        key_valid = jnp.pad(key_valid, ((0, 0), (0, 0), (0, S_pad - S)))

    # Whole transformer stack in one Pallas kernel.
    x = encoder_stack(x, key_valid, params["stacked"], n_heads)  # (B, S_pad, W) f32

    # Select the last real (EOT) token: x[arange(B), sum(mask[:,0],1) - 1].
    lengths = jnp.sum(mask[:, 0], axis=1).astype(jnp.int32) - 1
    x_last = x[jnp.arange(B), lengths]                           # (B, W)

    # Projection + L2 normalize (Pallas kernel).
    return project_and_normalize(x_last, params["projection"])


# ----------------------------------------------------------------------------
# Demo
# ----------------------------------------------------------------------------
if __name__ == "__main__":
    B, S = 2, 8
    VOCAB, WIDTH, HEADS, LAYERS, EMB = 64, 32, 4, 2, 16

    key = jax.random.PRNGKey(0)
    k_tok, k_par = jax.random.split(key)

    text = jax.random.randint(k_tok, (B, S), 1, VOCAB, dtype=jnp.int32)
    lengths = jnp.array([5, 8], dtype=jnp.int32)                 # valid tokens per row
    valid = (jnp.arange(S)[None, :] < lengths[:, None]).astype(jnp.float32)  # (B, S)
    mask = jnp.repeat(valid[:, None, :], S, axis=1)              # (B, S, S) padding mask

    params = init_params(k_par, VOCAB, WIDTH, LAYERS, HEADS, EMB)

    out = text_encoder_forward(text, mask, params, HEADS)
    out = jax.block_until_ready(out)

    assert out.shape == (B, EMB)
    assert bool(jnp.all(jnp.isfinite(out)))
    # L2-normalized rows: norms should be ~1 (bf16 matmuls + approx recip OK).
    assert bool(jnp.allclose(jnp.linalg.norm(out, axis=-1), 1.0, atol=1e-3))
    print("KERNEL_OK")
</pallas_src>

<mosaic_0001>
module attributes {stable_mosaic.version = 11 : i64} {
  func.func @encoder_stack_kernel(%arg0: i32, %arg1: i32, %arg2: memref<1x8x32xbf16, #tpu.memory_space<vmem>>, %arg3: memref<1x1x8xf32, #tpu.memory_space<vmem>>, %arg4: memref<1x1x32xf32, #tpu.memory_space<vmem>>, %arg5: memref<1x1x32xf32, #tpu.memory_space<vmem>>, %arg6: memref<1x32x32xbf16, #tpu.memory_space<vmem>>, %arg7: memref<1x1x32xf32, #tpu.memory_space<vmem>>, %arg8: memref<1x32x32xbf16, #tpu.memory_space<vmem>>, %arg9: memref<1x1x32xf32, #tpu.memory_space<vmem>>, %arg10: memref<1x32x32xbf16, #tpu.memory_space<vmem>>, %arg11: memref<1x1x32xf32, #tpu.memory_space<vmem>>, %arg12: memref<1x32x32xbf16, #tpu.memory_space<vmem>>, %arg13: memref<1x1x32xf32, #tpu.memory_space<vmem>>, %arg14: memref<1x1x32xf32, #tpu.memory_space<vmem>>, %arg15: memref<1x1x32xf32, #tpu.memory_space<vmem>>, %arg16: memref<1x32x128xbf16, #tpu.memory_space<vmem>>, %arg17: memref<1x1x128xf32, #tpu.memory_space<vmem>>, %arg18: memref<1x128x32xbf16, #tpu.memory_space<vmem>>, %arg19: memref<1x1x32xf32, #tpu.memory_space<vmem>>, %arg20: memref<1x8x32xf32, #tpu.memory_space<vmem>>) attributes {dimension_semantics = [#tpu.dimension_semantics<parallel>, #tpu.dimension_semantics<arbitrary>], iteration_bounds = array<i64: 2, 2>, scalar_prefetch = 0 : i64, scratch_operands = 0 : i64, tpu.core_type = #tpu.core_type<tc>, window_params = [{transform_indices = @transform_0, window_bounds = array<i64: 1, 8, 32>}, {transform_indices = @transform_1, window_bounds = array<i64: 1, 1, 8>}, {transform_indices = @transform_2, window_bounds = array<i64: 1, 1, 32>}, {transform_indices = @transform_3, window_bounds = array<i64: 1, 1, 32>}, {transform_indices = @transform_4, window_bounds = array<i64: 1, 32, 32>}, {transform_indices = @transform_5, window_bounds = array<i64: 1, 1, 32>}, {transform_indices = @transform_6, window_bounds = array<i64: 1, 32, 32>}, {transform_indices = @transform_7, window_bounds = array<i64: 1, 1, 32>}, {transform_indices = @transform_8, window_bounds = array<i64: 1, 32, 32>}, {transform_indices = @transform_9, window_bounds = array<i64: 1, 1, 32>}, {transform_indices = @transform_10, window_bounds = array<i64: 1, 32, 32>}, {transform_indices = @transform_11, window_bounds = array<i64: 1, 1, 32>}, {transform_indices = @transform_12, window_bounds = array<i64: 1, 1, 32>}, {transform_indices = @transform_13, window_bounds = array<i64: 1, 1, 32>}, {transform_indices = @transform_14, window_bounds = array<i64: 1, 32, 128>}, {transform_indices = @transform_15, window_bounds = array<i64: 1, 1, 128>}, {transform_indices = @transform_16, window_bounds = array<i64: 1, 128, 32>}, {transform_indices = @transform_17, window_bounds = array<i64: 1, 1, 32>}, {transform_indices = @transform_18, window_bounds = array<i64: 1, 8, 32>}]} {
    %c0_i32 = arith.constant 0 : i32
    %0 = arith.cmpi eq, %arg1, %c0_i32 : i32
    %1 = arith.extui %0 : i1 to i32
    %c0_i32_0 = arith.constant 0 : i32
    %2 = arith.cmpi ne, %1, %c0_i32_0 : i32
    scf.if %2 {
      %c0_96 = arith.constant 0 : index
      %c0_97 = arith.constant 0 : index
      %c0_98 = arith.constant 0 : index
      %208 = vector.load %arg2[%c0_96, %c0_97, %c0_98] : memref<1x8x32xbf16, #tpu.memory_space<vmem>>, vector<1x8x32xbf16>
      %209 = arith.extf %208 : vector<1x8x32xbf16> to vector<1x8x32xf32>
      %c0_99 = arith.constant 0 : index
      %c0_100 = arith.constant 0 : index
      %c0_101 = arith.constant 0 : index
      %210 = vector.load %arg20[%c0_99, %c0_100, %c0_101] : memref<1x8x32xf32, #tpu.memory_space<vmem>>, vector<1x8x32xf32>
      tpu.vector_store %arg20[%c0_99, %c0_100, %c0_101], %209 {strides = array<i32>} : memref<1x8x32xf32, #tpu.memory_space<vmem>>, vector<1x8x32xf32>,
    } else {
    }
    %c0 = arith.constant 0 : index
    %c0_1 = arith.constant 0 : index
    %c0_2 = arith.constant 0 : index
    %3 = vector.load %arg20[%c0, %c0_1, %c0_2] : memref<1x8x32xf32, #tpu.memory_space<vmem>>, vector<1x8x32xf32>
    %4 = vector.shape_cast %3 : vector<1x8x32xf32> to vector<8x32xf32>
    %c0_3 = arith.constant 0 : index
    %c0_4 = arith.constant 0 : index
    %c0_5 = arith.constant 0 : index
    %5 = vector.load %arg3[%c0_3, %c0_4, %c0_5] : memref<1x1x8xf32, #tpu.memory_space<vmem>>, vector<1x1x8xf32>
    %cst = arith.constant 0.000000e+00 : f32
    %6 = vector.broadcast %cst : f32 to vector<1x1x8xf32>
    %7 = arith.cmpf oeq, %5, %6 : vector<1x1x8xf32>
    %cst_6 = arith.constant -1.000000e+09 : f32
    %cst_7 = arith.constant 0.000000e+00 : f32
    %8 = vector.broadcast %cst_6 : f32 to vector<1x1x8xf32>
    %9 = vector.broadcast %cst_7 : f32 to vector<1x1x8xf32>
    %10 = arith.select %7, %8, %9 : vector<1x1x8xi1>, vector<1x1x8xf32>
    %c0_8 = arith.constant 0 : index
    %c0_9 = arith.constant 0 : index
    %c0_10 = arith.constant 0 : index
    %11 = vector.load %arg4[%c0_8, %c0_9, %c0_10] : memref<1x1x32xf32, #tpu.memory_space<vmem>>, vector<1x1x32xf32>
    %12 = vector.shape_cast %11 : vector<1x1x32xf32> to vector<1x32xf32>
    %c0_11 = arith.constant 0 : index
    %c0_12 = arith.constant 0 : index
    %c0_13 = arith.constant 0 : index
    %13 = vector.load %arg5[%c0_11, %c0_12, %c0_13] : memref<1x1x32xf32, #tpu.memory_space<vmem>>, vector<1x1x32xf32>
    %14 = vector.shape_cast %13 : vector<1x1x32xf32> to vector<1x32xf32>
    %cst_14 = arith.constant dense<0.000000e+00> : vector<8xf32>
    %15 = vector.multi_reduction <add>, %4, %cst_14 [1] : vector<8x32xf32> to vector<8xf32>
    %16 = vector.shape_cast %15 : vector<8xf32> to vector<8x1xf32>
    %cst_15 = arith.constant 3.200000e+01 : f32
    %17 = vector.broadcast %cst_15 : f32 to vector<8x1xf32>
    %18 = arith.divf %16, %17 : vector<8x1xf32>
    %19 = vector.broadcast %18 : vector<8x1xf32> to vector<8x32xf32>
    %20 = arith.subf %4, %19 : vector<8x32xf32>
    %21 = arith.mulf %20, %20 : vector<8x32xf32>
    %cst_16 = arith.constant dense<0.000000e+00> : vector<8xf32>
    %22 = vector.multi_reduction <add>, %21, %cst_16 [1] : vector<8x32xf32> to vector<8xf32>
    %23 = vector.shape_cast %22 : vector<8xf32> to vector<8x1xf32>
    %cst_17 = arith.constant 3.200000e+01 : f32
    %24 = vector.broadcast %cst_17 : f32 to vector<8x1xf32>
    %25 = arith.divf %23, %24 : vector<8x1xf32>
    %26 = vector.broadcast %18 : vector<8x1xf32> to vector<8x32xf32>
    %27 = arith.subf %4, %26 : vector<8x32xf32>
    %cst_18 = arith.constant 9.99999974E-6 : f32
    %28 = vector.broadcast %cst_18 : f32 to vector<8x1xf32>
    %29 = arith.addf %25, %28 : vector<8x1xf32>
    %30 = math.rsqrt %29 : vector<8x1xf32>
    %31 = vector.broadcast %30 : vector<8x1xf32> to vector<8x32xf32>
    %32 = arith.mulf %27, %31 : vector<8x32xf32>
    %33 = vector.broadcast %12 : vector<1x32xf32> to vector<8x32xf32>
    %34 = arith.mulf %32, %33 : vector<8x32xf32>
    %35 = vector.broadcast %14 : vector<1x32xf32> to vector<8x32xf32>
    %36 = arith.addf %34, %35 : vector<8x32xf32>
    %37 = arith.truncf %36 : vector<8x32xf32> to vector<8x32xbf16>
    %c0_19 = arith.constant 0 : index
    %c0_20 = arith.constant 0 : index
    %c0_21 = arith.constant 0 : index
    %38 = vector.load %arg6[%c0_19, %c0_20, %c0_21] : memref<1x32x32xbf16, #tpu.memory_space<vmem>>, vector<1x32x32xbf16>
    %39 = vector.shape_cast %38 : vector<1x32x32xbf16> to vector<32x32xbf16>
    %cst_22 = arith.constant dense<0.000000e+00> : vector<8x32xf32>
    %40 = tpu.matmul %37, %39, %cst_22 {dimension_numbers = #tpu.dot_dimension_numbers<[1], [0], [0], [1], [0, 0, 1, 1], [], []>} : vector<8x32xbf16>, vector<32x32xbf16>, vector<8x32xf32> -> vector<8x32xf32>
    %c0_23 = arith.constant 0 : index
    %c0_24 = arith.constant 0 : index
    %c0_25 = arith.constant 0 : index
    %41 = vector.load %arg7[%c0_23, %c0_24, %c0_25] : memref<1x1x32xf32, #tpu.memory_space<vmem>>, vector<1x1x32xf32>
    %42 = vector.shape_cast %41 : vector<1x1x32xf32> to vector<1x32xf32>
    %43 = vector.broadcast %42 : vector<1x32xf32> to vector<8x32xf32>
    %44 = arith.addf %40, %43 : vector<8x32xf32>
    %c0_26 = arith.constant 0 : index
    %c0_27 = arith.constant 0 : index
    %c0_28 = arith.constant 0 : index
    %45 = vector.load %arg8[%c0_26, %c0_27, %c0_28] : memref<1x32x32xbf16, #tpu.memory_space<vmem>>, vector<1x32x32xbf16>
    %46 = vector.shape_cast %45 : vector<1x32x32xbf16> to vector<32x32xbf16>
    %cst_29 = arith.constant dense<0.000000e+00> : vector<8x32xf32>
    %47 = tpu.matmul %37, %46, %cst_29 {dimension_numbers = #tpu.dot_dimension_numbers<[1], [0], [0], [1], [0, 0, 1, 1], [], []>} : vector<8x32xbf16>, vector<32x32xbf16>, vector<8x32xf32> -> vector<8x32xf32>
    %c0_30 = arith.constant 0 : index
    %c0_31 = arith.constant 0 : index
    %c0_32 = arith.constant 0 : index
    %48 = vector.load %arg9[%c0_30, %c0_31, %c0_32] : memref<1x1x32xf32, #tpu.memory_space<vmem>>, vector<1x1x32xf32>
    %49 = vector.shape_cast %48 : vector<1x1x32xf32> to vector<1x32xf32>
    %50 = vector.broadcast %49 : vector<1x32xf32> to vector<8x32xf32>
    %51 = arith.addf %47, %50 : vector<8x32xf32>
    %c0_33 = arith.constant 0 : index
    %c0_34 = arith.constant 0 : index
    %c0_35 = arith.constant 0 : index
    %52 = vector.load %arg10[%c0_33, %c0_34, %c0_35] : memref<1x32x32xbf16, #tpu.memory_space<vmem>>, vector<1x32x32xbf16>
    %53 = vector.shape_cast %52 : vector<1x32x32xbf16> to vector<32x32xbf16>
    %cst_36 = arith.constant dense<0.000000e+00> : vector<8x32xf32>
    %54 = tpu.matmul %37, %53, %cst_36 {dimension_numbers = #tpu.dot_dimension_numbers<[1], [0], [0], [1], [0, 0, 1, 1], [], []>} : vector<8x32xbf16>, vector<32x32xbf16>, vector<8x32xf32> -> vector<8x32xf32>
    %c0_37 = arith.constant 0 : index
    %c0_38 = arith.constant 0 : index
    %c0_39 = arith.constant 0 : index
    %55 = vector.load %arg11[%c0_37, %c0_38, %c0_39] : memref<1x1x32xf32, #tpu.memory_space<vmem>>, vector<1x1x32xf32>
    %56 = vector.shape_cast %55 : vector<1x1x32xf32> to vector<1x32xf32>
    %57 = vector.broadcast %56 : vector<1x32xf32> to vector<8x32xf32>
    %58 = arith.addf %54, %57 : vector<8x32xf32>
    %cst_40 = arith.constant 0.353553385 : f32
    %59 = vector.broadcast %cst_40 : f32 to vector<8x32xf32>
    %60 = arith.mulf %44, %59 : vector<8x32xf32>
    %61 = arith.truncf %60 : vector<8x32xf32> to vector<8x32xbf16>
    %62 = vector.shape_cast %61 : vector<8x32xbf16> to vector<1x8x32xbf16>
    %63 = arith.truncf %51 : vector<8x32xf32> to vector<8x32xbf16>
    %64 = vector.shape_cast %63 : vector<8x32xbf16> to vector<1x8x32xbf16>
    %65 = arith.truncf %58 : vector<8x32xf32> to vector<8x32xbf16>
    %66 = vector.shape_cast %65 : vector<8x32xbf16> to vector<1x8x32xbf16>
    %67 = vector.extract_strided_slice %62 {offsets = [0, 0, 0], sizes = [1, 8, 8], strides = [1, 1, 1]} : vector<1x8x32xbf16> to vector<1x8x8xbf16>
    %68 = vector.extract_strided_slice %64 {offsets = [0, 0, 0], sizes = [1, 8, 8], strides = [1, 1, 1]} : vector<1x8x32xbf16> to vector<1x8x8xbf16>
    "tpu.trace_start"() <{level = 10 : i32, message = "bqd,bkd->bqk"}> : () -> ()
    %cst_41 = arith.constant dense<0.000000e+00> : vector<1x8x8xf32>
    %69 = tpu.matmul %67, %68, %cst_41 {dimension_numbers = #tpu.dot_dimension_numbers<[2], [2], [1], [1], [0, 0, 0, 1, 1, 1], [0], [0]>} : vector<1x8x8xbf16>, vector<1x8x8xbf16>, vector<1x8x8xf32> -> vector<1x8x8xf32>
    "tpu.trace_stop"() : () -> ()
    %70 = vector.broadcast %10 : vector<1x1x8xf32> to vector<1x8x8xf32>
    %71 = arith.addf %69, %70 : vector<1x8x8xf32>
    %cst_42 = arith.constant dense<0xFF800000> : vector<1x8xf32>
    %72 = vector.multi_reduction <maximumf>, %71, %cst_42 [2] : vector<1x8x8xf32> to vector<1x8xf32>
    %73 = vector.shape_cast %72 : vector<1x8xf32> to vector<1x8x1xf32>
    %74 = vector.broadcast %73 : vector<1x8x1xf32> to vector<1x8x8xf32>
    %75 = arith.subf %71, %74 : vector<1x8x8xf32>
    %76 = math.exp %75 : vector<1x8x8xf32>
    %cst_43 = arith.constant dense<0.000000e+00> : vector<1x8xf32>
    %77 = vector.multi_reduction <add>, %76, %cst_43 [2] : vector<1x8x8xf32> to vector<1x8xf32>
    %78 = vector.shape_cast %77 : vector<1x8xf32> to vector<1x8x1xf32>
    %79 = tpu.reciprocal %78 {approx = true} : vector<1x8x1xf32> -> vector<1x8x1xf32>
    %80 = vector.broadcast %79 : vector<1x8x1xf32> to vector<1x8x8xf32>
    %81 = arith.mulf %76, %80 : vector<1x8x8xf32>
    %82 = arith.truncf %81 : vector<1x8x8xf32> to vector<1x8x8xbf16>
    %83 = vector.extract_strided_slice %66 {offsets = [0, 0, 0], sizes = [1, 8, 8], strides = [1, 1, 1]} : vector<1x8x32xbf16> to vector<1x8x8xbf16>
    "tpu.trace_start"() <{level = 10 : i32, message = "bqk,bkd->bqd"}> : () -> ()
    %cst_44 = arith.constant dense<0.000000e+00> : vector<1x8x8xf32>
    %84 = tpu.matmul %82, %83, %cst_44 {dimension_numbers = #tpu.dot_dimension_numbers<[2], [1], [1], [2], [0, 0, 0, 1, 1, 2], [0], [0]>} : vector<1x8x8xbf16>, vector<1x8x8xbf16>, vector<1x8x8xf32> -> vector<1x8x8xf32>
    "tpu.trace_stop"() : () -> ()
    %85 = vector.extract_strided_slice %62 {offsets = [0, 0, 8], sizes = [1, 8, 8], strides = [1, 1, 1]} : vector<1x8x32xbf16> to vector<1x8x8xbf16>
    %86 = vector.extract_strided_slice %64 {offsets = [0, 0, 8], sizes = [1, 8, 8], strides = [1, 1, 1]} : vector<1x8x32xbf16> to vector<1x8x8xbf16>
    "tpu.trace_start"() <{level = 10 : i32, message = "bqd,bkd->bqk"}> : () -> ()
    %cst_45 = arith.constant dense<0.000000e+00> : vector<1x8x8xf32>
    %87 = tpu.matmul %85, %86, %cst_45 {dimension_numbers = #tpu.dot_dimension_numbers<[2], [2], [1], [1], [0, 0, 0, 1, 1, 1], [0], [0]>} : vector<1x8x8xbf16>, vector<1x8x8xbf16>, vector<1x8x8xf32> -> vector<1x8x8xf32>
    "tpu.trace_stop"() : () -> ()
    %88 = vector.broadcast %10 : vector<1x1x8xf32> to vector<1x8x8xf32>
    %89 = arith.addf %87, %88 : vector<1x8x8xf32>
    %cst_46 = arith.constant dense<0xFF800000> : vector<1x8xf32>
    %90 = vector.multi_reduction <maximumf>, %89, %cst_46 [2] : vector<1x8x8xf32> to vector<1x8xf32>
    %91 = vector.shape_cast %90 : vector<1x8xf32> to vector<1x8x1xf32>
    %92 = vector.broadcast %91 : vector<1x8x1xf32> to vector<1x8x8xf32>
    %93 = arith.subf %89, %92 : vector<1x8x8xf32>
    %94 = math.exp %93 : vector<1x8x8xf32>
    %cst_47 = arith.constant dense<0.000000e+00> : vector<1x8xf32>
    %95 = vector.multi_reduction <add>, %94, %cst_47 [2] : vector<1x8x8xf32> to vector<1x8xf32>
    %96 = vector.shape_cast %95 : vector<1x8xf32> to vector<1x8x1xf32>
    %97 = tpu.reciprocal %96 {approx = true} : vector<1x8x1xf32> -> vector<1x8x1xf32>
    %98 = vector.broadcast %97 : vector<1x8x1xf32> to vector<1x8x8xf32>
    %99 = arith.mulf %94, %98 : vector<1x8x8xf32>
    %100 = arith.truncf %99 : vector<1x8x8xf32> to vector<1x8x8xbf16>
    %101 = vector.extract_strided_slice %66 {offsets = [0, 0, 8], sizes = [1, 8, 8], strides = [1, 1, 1]} : vector<1x8x32xbf16> to vector<1x8x8xbf16>
    "tpu.trace_start"() <{level = 10 : i32, message = "bqk,bkd->bqd"}> : () -> ()
    %cst_48 = arith.constant dense<0.000000e+00> : vector<1x8x8xf32>
    %102 = tpu.matmul %100, %101, %cst_48 {dimension_numbers = #tpu.dot_dimension_numbers<[2], [1], [1], [2], [0, 0, 0, 1, 1, 2], [0], [0]>} : vector<1x8x8xbf16>, vector<1x8x8xbf16>, vector<1x8x8xf32> -> vector<1x8x8xf32>
    "tpu.trace_stop"() : () -> ()
    %103 = vector.extract_strided_slice %62 {offsets = [0, 0, 16], sizes = [1, 8, 8], strides = [1, 1, 1]} : vector<1x8x32xbf16> to vector<1x8x8xbf16>
    %104 = vector.extract_strided_slice %64 {offsets = [0, 0, 16], sizes = [1, 8, 8], strides = [1, 1, 1]} : vector<1x8x32xbf16> to vector<1x8x8xbf16>
    "tpu.trace_start"() <{level = 10 : i32, message = "bqd,bkd->bqk"}> : () -> ()
    %cst_49 = arith.constant dense<0.000000e+00> : vector<1x8x8xf32>
    %105 = tpu.matmul %103, %104, %cst_49 {dimension_numbers = #tpu.dot_dimension_numbers<[2], [2], [1], [1], [0, 0, 0, 1, 1, 1], [0], [0]>} : vector<1x8x8xbf16>, vector<1x8x8xbf16>, vector<1x8x8xf32> -> vector<1x8x8xf32>
    "tpu.trace_stop"() : () -> ()
    %106 = vector.broadcast %10 : vector<1x1x8xf32> to vector<1x8x8xf32>
    %107 = arith.addf %105, %106 : vector<1x8x8xf32>
    %cst_50 = arith.constant dense<0xFF800000> : vector<1x8xf32>
    %108 = vector.multi_reduction <maximumf>, %107, %cst_50 [2] : vector<1x8x8xf32> to vector<1x8xf32>
    %109 = vector.shape_cast %108 : vector<1x8xf32> to vector<1x8x1xf32>
    %110 = vector.broadcast %109 : vector<1x8x1xf32> to vector<1x8x8xf32>
    %111 = arith.subf %107, %110 : vector<1x8x8xf32>
    %112 = math.exp %111 : vector<1x8x8xf32>
    %cst_51 = arith.constant dense<0.000000e+00> : vector<1x8xf32>
    %113 = vector.multi_reduction <add>, %112, %cst_51 [2] : vector<1x8x8xf32> to vector<1x8xf32>
    %114 = vector.shape_cast %113 : vector<1x8xf32> to vector<1x8x1xf32>
    %115 = tpu.reciprocal %114 {approx = true} : vector<1x8x1xf32> -> vector<1x8x1xf32>
    %116 = vector.broadcast %115 : vector<1x8x1xf32> to vector<1x8x8xf32>
    %117 = arith.mulf %112, %116 : vector<1x8x8xf32>
    %118 = arith.truncf %117 : vector<1x8x8xf32> to vector<1x8x8xbf16>
    %119 = vector.extract_strided_slice %66 {offsets = [0, 0, 16], sizes = [1, 8, 8], strides = [1, 1, 1]} : vector<1x8x32xbf16> to vector<1x8x8xbf16>
    "tpu.trace_start"() <{level = 10 : i32, message = "bqk,bkd->bqd"}> : () -> ()
    %cst_52 = arith.constant dense<0.000000e+00> : vector<1x8x8xf32>
    %120 = tpu.matmul %118, %119, %cst_52 {dimension_numbers = #tpu.dot_dimension_numbers<[2], [1], [1], [2], [0, 0, 0, 1, 1, 2], [0], [0]>} : vector<1x8x8xbf16>, vector<1x8x8xbf16>, vector<1x8x8xf32> -> vector<1x8x8xf32>
    "tpu.trace_stop"() : () -> ()
    %121 = vector.extract_strided_slice %62 {offsets = [0, 0, 24], sizes = [1, 8, 8], strides = [1, 1, 1]} : vector<1x8x32xbf16> to vector<1x8x8xbf16>
    %122 = vector.extract_strided_slice %64 {offsets = [0, 0, 24], sizes = [1, 8, 8], strides = [1, 1, 1]} : vector<1x8x32xbf16> to vector<1x8x8xbf16>
    "tpu.trace_start"() <{level = 10 : i32, message = "bqd,bkd->bqk"}> : () -> ()
    %cst_53 = arith.constant dense<0.000000e+00> : vector<1x8x8xf32>
    %123 = tpu.matmul %121, %122, %cst_53 {dimension_numbers = #tpu.dot_dimension_numbers<[2], [2], [1], [1], [0, 0, 0, 1, 1, 1], [0], [0]>} : vector<1x8x8xbf16>, vector<1x8x8xbf16>, vector<1x8x8xf32> -> vector<1x8x8xf32>
    "tpu.trace_stop"() : () -> ()
    %124 = vector.broadcast %10 : vector<1x1x8xf32> to vector<1x8x8xf32>
    %125 = arith.addf %123, %124 : vector<1x8x8xf32>
    %cst_54 = arith.constant dense<0xFF800000> : vector<1x8xf32>
    %126 = vector.multi_reduction <maximumf>, %125, %cst_54 [2] : vector<1x8x8xf32> to vector<1x8xf32>
    %127 = vector.shape_cast %126 : vector<1x8xf32> to vector<1x8x1xf32>
    %128 = vector.broadcast %127 : vector<1x8x1xf32> to vector<1x8x8xf32>
    %129 = arith.subf %125, %128 : vector<1x8x8xf32>
    %130 = math.exp %129 : vector<1x8x8xf32>
    %cst_55 = arith.constant dense<0.000000e+00> : vector<1x8xf32>
    %131 = vector.multi_reduction <add>, %130, %cst_55 [2] : vector<1x8x8xf32> to vector<1x8xf32>
    %132 = vector.shape_cast %131 : vector<1x8xf32> to vector<1x8x1xf32>
    %133 = tpu.reciprocal %132 {approx = true} : vector<1x8x1xf32> -> vector<1x8x1xf32>
    %134 = vector.broadcast %133 : vector<1x8x1xf32> to vector<1x8x8xf32>
    %135 = arith.mulf %130, %134 : vector<1x8x8xf32>
    %136 = arith.truncf %135 : vector<1x8x8xf32> to vector<1x8x8xbf16>
    %137 = vector.extract_strided_slice %66 {offsets = [0, 0, 24], sizes = [1, 8, 8], strides = [1, 1, 1]} : vector<1x8x32xbf16> to vector<1x8x8xbf16>
    "tpu.trace_start"() <{level = 10 : i32, message = "bqk,bkd->bqd"}> : () -> ()
    %cst_56 = arith.constant dense<0.000000e+00> : vector<1x8x8xf32>
    %138 = tpu.matmul %136, %137, %cst_56 {dimension_numbers = #tpu.dot_dimension_numbers<[2], [1], [1], [2], [0, 0, 0, 1, 1, 2], [0], [0]>} : vector<1x8x8xbf16>, vector<1x8x8xbf16>, vector<1x8x8xf32> -> vector<1x8x8xf32>
    "tpu.trace_stop"() : () -> ()
    %139 = tpu.concatenate %84, %102, %120, %138 in 2 : vector<1x8x8xf32>, vector<1x8x8xf32>, vector<1x8x8xf32>, vector<1x8x8xf32> -> vector<1x8x32xf32>
    %140 = vector.shape_cast %139 : vector<1x8x32xf32> to vector<8x32xf32>
    %141 = arith.truncf %140 : vector<8x32xf32> to vector<8x32xbf16>
    %c0_57 = arith.constant 0 : index
    %c0_58 = arith.constant 0 : index
    %c0_59 = arith.constant 0 : index
    %142 = vector.load %arg12[%c0_57, %c0_58, %c0_59] : memref<1x32x32xbf16, #tpu.memory_space<vmem>>, vector<1x32x32xbf16>
    %143 = vector.shape_cast %142 : vector<1x32x32xbf16> to vector<32x32xbf16>
    %cst_60 = arith.constant dense<0.000000e+00> : vector<8x32xf32>
    %144 = tpu.matmul %141, %143, %cst_60 {dimension_numbers = #tpu.dot_dimension_numbers<[1], [0], [0], [1], [0, 0, 1, 1], [], []>} : vector<8x32xbf16>, vector<32x32xbf16>, vector<8x32xf32> -> vector<8x32xf32>
    %c0_61 = arith.constant 0 : index
    %c0_62 = arith.constant 0 : index
    %c0_63 = arith.constant 0 : index
    %145 = vector.load %arg13[%c0_61, %c0_62, %c0_63] : memref<1x1x32xf32, #tpu.memory_space<vmem>>, vector<1x1x32xf32>
    %146 = vector.shape_cast %145 : vector<1x1x32xf32> to vector<1x32xf32>
    %147 = vector.broadcast %146 : vector<1x32xf32> to vector<8x32xf32>
    %148 = arith.addf %144, %147 : vector<8x32xf32>
    %149 = arith.addf %4, %148 : vector<8x32xf32>
    %c0_64 = arith.constant 0 : index
    %c0_65 = arith.constant 0 : index
    %c0_66 = arith.constant 0 : index
    %150 = vector.load %arg14[%c0_64, %c0_65, %c0_66] : memref<1x1x32xf32, #tpu.memory_space<vmem>>, vector<1x1x32xf32>
    %151 = vector.shape_cast %150 : vector<1x1x32xf32> to vector<1x32xf32>
    %c0_67 = arith.constant 0 : index
    %c0_68 = arith.constant 0 : index
    %c0_69 = arith.constant 0 : index
    %152 = vector.load %arg15[%c0_67, %c0_68, %c0_69] : memref<1x1x32xf32, #tpu.memory_space<vmem>>, vector<1x1x32xf32>
    %153 = vector.shape_cast %152 : vector<1x1x32xf32> to vector<1x32xf32>
    %cst_70 = arith.constant dense<0.000000e+00> : vector<8xf32>
    %154 = vector.multi_reduction <add>, %149, %cst_70 [1] : vector<8x32xf32> to vector<8xf32>
    %155 = vector.shape_cast %154 : vector<8xf32> to vector<8x1xf32>
    %cst_71 = arith.constant 3.200000e+01 : f32
    %156 = vector.broadcast %cst_71 : f32 to vector<8x1xf32>
    %157 = arith.divf %155, %156 : vector<8x1xf32>
    %158 = vector.broadcast %157 : vector<8x1xf32> to vector<8x32xf32>
    %159 = arith.subf %149, %158 : vector<8x32xf32>
    %160 = arith.mulf %159, %159 : vector<8x32xf32>
    %cst_72 = arith.constant dense<0.000000e+00> : vector<8xf32>
    %161 = vector.multi_reduction <add>, %160, %cst_72 [1] : vector<8x32xf32> to vector<8xf32>
    %162 = vector.shape_cast %161 : vector<8xf32> to vector<8x1xf32>
    %cst_73 = arith.constant 3.200000e+01 : f32
    %163 = vector.broadcast %cst_73 : f32 to vector<8x1xf32>
    %164 = arith.divf %162, %163 : vector<8x1xf32>
    %165 = vector.broadcast %157 : vector<8x1xf32> to vector<8x32xf32>
    %166 = arith.subf %149, %165 : vector<8x32xf32>
    %cst_74 = arith.constant 9.99999974E-6 : f32
    %167 = vector.broadcast %cst_74 : f32 to vector<8x1xf32>
    %168 = arith.addf %164, %167 : vector<8x1xf32>
    %169 = math.rsqrt %168 : vector<8x1xf32>
    %170 = vector.broadcast %169 : vector<8x1xf32> to vector<8x32xf32>
    %171 = arith.mulf %166, %170 : vector<8x32xf32>
    %172 = vector.broadcast %151 : vector<1x32xf32> to vector<8x32xf32>
    %173 = arith.mulf %171, %172 : vector<8x32xf32>
    %174 = vector.broadcast %153 : vector<1x32xf32> to vector<8x32xf32>
    %175 = arith.addf %173, %174 : vector<8x32xf32>
    %176 = arith.truncf %175 : vector<8x32xf32> to vector<8x32xbf16>
    %c0_75 = arith.constant 0 : index
    %c0_76 = arith.constant 0 : index
    %c0_77 = arith.constant 0 : index
    %177 = vector.load %arg16[%c0_75, %c0_76, %c0_77] : memref<1x32x128xbf16, #tpu.memory_space<vmem>>, vector<1x32x128xbf16>
    %178 = vector.shape_cast %177 : vector<1x32x128xbf16> to vector<32x128xbf16>
    %cst_78 = arith.constant dense<0.000000e+00> : vector<8x128xf32>
    %179 = tpu.matmul %176, %178, %cst_78 {dimension_numbers = #tpu.dot_dimension_numbers<[1], [0], [0], [1], [0, 0, 1, 1], [], []>} : vector<8x32xbf16>, vector<32x128xbf16>, vector<8x128xf32> -> vector<8x128xf32>
    %c0_79 = arith.constant 0 : index
    %c0_80 = arith.constant 0 : index
    %c0_81 = arith.constant 0 : index
    %180 = vector.load %arg17[%c0_79, %c0_80, %c0_81] : memref<1x1x128xf32, #tpu.memory_space<vmem>>, vector<1x1x128xf32>
    %181 = vector.shape_cast %180 : vector<1x1x128xf32> to vector<1x128xf32>
    %182 = vector.broadcast %181 : vector<1x128xf32> to vector<8x128xf32>
    %183 = arith.addf %179, %182 : vector<8x128xf32>
    %184 = arith.mulf %183, %183 : vector<8x128xf32>
    %185 = arith.mulf %183, %184 : vector<8x128xf32>
    %cst_82 = arith.constant 4.471500e-02 : f32
    %186 = vector.broadcast %cst_82 : f32 to vector<8x128xf32>
    %187 = arith.mulf %186, %185 : vector<8x128xf32>
    %188 = arith.addf %183, %187 : vector<8x128xf32>
    %cst_83 = arith.constant 0.797884583 : f32
    %189 = vector.broadcast %cst_83 : f32 to vector<8x128xf32>
    %190 = arith.mulf %189, %188 : vector<8x128xf32>
    %191 = math.tanh %190 : vector<8x128xf32>
    %cst_84 = arith.constant 1.000000e+00 : f32
    %192 = vector.broadcast %cst_84 : f32 to vector<8x128xf32>
    %193 = arith.addf %192, %191 : vector<8x128xf32>
    %cst_85 = arith.constant 5.000000e-01 : f32
    %194 = vector.broadcast %cst_85 : f32 to vector<8x128xf32>
    %195 = arith.mulf %194, %193 : vector<8x128xf32>
    %196 = arith.mulf %183, %195 : vector<8x128xf32>
    %197 = arith.truncf %196 : vector<8x128xf32> to vector<8x128xbf16>
    %c0_86 = arith.constant 0 : index
    %c0_87 = arith.constant 0 : index
    %c0_88 = arith.constant 0 : index
    %198 = vector.load %arg18[%c0_86, %c0_87, %c0_88] : memref<1x128x32xbf16, #tpu.memory_space<vmem>>, vector<1x128x32xbf16>
    %199 = vector.shape_cast %198 : vector<1x128x32xbf16> to vector<128x32xbf16>
    %cst_89 = arith.constant dense<0.000000e+00> : vector<8x32xf32>
    %200 = tpu.matmul %197, %199, %cst_89 {dimension_numbers = #tpu.dot_dimension_numbers<[1], [0], [0], [1], [0, 0, 1, 1], [], []>} : vector<8x128xbf16>, vector<128x32xbf16>, vector<8x32xf32> -> vector<8x32xf32>
    %c0_90 = arith.constant 0 : index
    %c0_91 = arith.constant 0 : index
    %c0_92 = arith.constant 0 : index
    %201 = vector.load %arg19[%c0_90, %c0_91, %c0_92] : memref<1x1x32xf32, #tpu.memory_space<vmem>>, vector<1x1x32xf32>
    %202 = vector.shape_cast %201 : vector<1x1x32xf32> to vector<1x32xf32>
    %203 = vector.broadcast %202 : vector<1x32xf32> to vector<8x32xf32>
    %204 = arith.addf %200, %203 : vector<8x32xf32>
    %205 = arith.addf %149, %204 : vector<8x32xf32>
    %206 = vector.shape_cast %205 : vector<8x32xf32> to vector<1x8x32xf32>
    %c0_93 = arith.constant 0 : index
    %c0_94 = arith.constant 0 : index
    %c0_95 = arith.constant 0 : index
    %207 = vector.load %arg20[%c0_93, %c0_94, %c0_95] : memref<1x8x32xf32, #tpu.memory_space<vmem>>, vector<1x8x32xf32>
    tpu.vector_store %arg20[%c0_93, %c0_94, %c0_95], %206 {strides = array<i32>} : memref<1x8x32xf32, #tpu.memory_space<vmem>>, vector<1x8x32xf32>,
    return
  }
  func.func @transform_0(%arg0: i32, %arg1: i32) -> (i32, i32, i32) {
    %c0_i32 = arith.constant 0 : i32
    %c0_i32_0 = arith.constant 0 : i32
    %c0_i32_1 = arith.constant 0 : i32
    return %arg0, %c0_i32, %c0_i32_0 : i32, i32, i32
  }
  func.func @transform_1(%arg0: i32, %arg1: i32) -> (i32, i32, i32) {
    %c0_i32 = arith.constant 0 : i32
    %c0_i32_0 = arith.constant 0 : i32
    %c0_i32_1 = arith.constant 0 : i32
    return %arg0, %c0_i32, %c0_i32_0 : i32, i32, i32
  }
  func.func @transform_2(%arg0: i32, %arg1: i32) -> (i32, i32, i32) {
    %c0_i32 = arith.constant 0 : i32
    %c0_i32_0 = arith.constant 0 : i32
    %c0_i32_1 = arith.constant 0 : i32
    return %arg1, %c0_i32, %c0_i32_0 : i32, i32, i32
  }
  func.func @transform_3(%arg0: i32, %arg1: i32) -> (i32, i32, i32) {
    %c0_i32 = arith.constant 0 : i32
    %c0_i32_0 = arith.constant 0 : i32
    %c0_i32_1 = arith.constant 0 : i32
    return %arg1, %c0_i32, %c0_i32_0 : i32, i32, i32
  }
  func.func @transform_4(%arg0: i32, %arg1: i32) -> (i32, i32, i32) {
    %c0_i32 = arith.constant 0 : i32
    %c0_i32_0 = arith.constant 0 : i32
    %c0_i32_1 = arith.constant 0 : i32
    return %arg1, %c0_i32, %c0_i32_0 : i32, i32, i32
  }
  func.func @transform_5(%arg0: i32, %arg1: i32) -> (i32, i32, i32) {
    %c0_i32 = arith.constant 0 : i32
    %c0_i32_0 = arith.constant 0 : i32
    %c0_i32_1 = arith.constant 0 : i32
    return %arg1, %c0_i32, %c0_i32_0 : i32, i32, i32
  }
  func.func @transform_6(%arg0: i32, %arg1: i32) -> (i32, i32, i32) {
    %c0_i32 = arith.constant 0 : i32
    %c0_i32_0 = arith.constant 0 : i32
    %c0_i32_1 = arith.constant 0 : i32
    return %arg1, %c0_i32, %c0_i32_0 : i32, i32, i32
  }
  func.func @transform_7(%arg0: i32, %arg1: i32) -> (i32, i32, i32) {
    %c0_i32 = arith.constant 0 : i32
    %c0_i32_0 = arith.constant 0 : i32
    %c0_i32_1 = arith.constant 0 : i32
    return %arg1, %c0_i32, %c0_i32_0 : i32, i32, i32
  }
  func.func @transform_8(%arg0: i32, %arg1: i32) -> (i32, i32, i32) {
    %c0_i32 = arith.constant 0 : i32
    %c0_i32_0 = arith.constant 0 : i32
    %c0_i32_1 = arith.constant 0 : i32
    return %arg1, %c0_i32, %c0_i32_0 : i32, i32, i32
  }
  func.func @transform_9(%arg0: i32, %arg1: i32) -> (i32, i32, i32) {
    %c0_i32 = arith.constant 0 : i32
    %c0_i32_0 = arith.constant 0 : i32
    %c0_i32_1 = arith.constant 0 : i32
    return %arg1, %c0_i32, %c0_i32_0 : i32, i32, i32
  }
  func.func @transform_10(%arg0: i32, %arg1: i32) -> (i32, i32, i32) {
    %c0_i32 = arith.constant 0 : i32
    %c0_i32_0 = arith.constant 0 : i32
    %c0_i32_1 = arith.constant 0 : i32
    return %arg1, %c0_i32, %c0_i32_0 : i32, i32, i32
  }
  func.func @transform_11(%arg0: i32, %arg1: i32) -> (i32, i32, i32) {
    %c0_i32 = arith.constant 0 : i32
    %c0_i32_0 = arith.constant 0 : i32
    %c0_i32_1 = arith.constant 0 : i32
    return %arg1, %c0_i32, %c0_i32_0 : i32, i32, i32
  }
  func.func @transform_12(%arg0: i32, %arg1: i32) -> (i32, i32, i32) {
    %c0_i32 = arith.constant 0 : i32
    %c0_i32_0 = arith.constant 0 : i32
    %c0_i32_1 = arith.constant 0 : i32
    return %arg1, %c0_i32, %c0_i32_0 : i32, i32, i32
  }
  func.func @transform_13(%arg0: i32, %arg1: i32) -> (i32, i32, i32) {
    %c0_i32 = arith.constant 0 : i32
    %c0_i32_0 = arith.constant 0 : i32
    %c0_i32_1 = arith.constant 0 : i32
    return %arg1, %c0_i32, %c0_i32_0 : i32, i32, i32
  }
  func.func @transform_14(%arg0: i32, %arg1: i32) -> (i32, i32, i32) {
    %c0_i32 = arith.constant 0 : i32
    %c0_i32_0 = arith.constant 0 : i32
    %c0_i32_1 = arith.constant 0 : i32
    return %arg1, %c0_i32, %c0_i32_0 : i32, i32, i32
  }
  func.func @transform_15(%arg0: i32, %arg1: i32) -> (i32, i32, i32) {
    %c0_i32 = arith.constant 0 : i32
    %c0_i32_0 = arith.constant 0 : i32
    %c0_i32_1 = arith.constant 0 : i32
    return %arg1, %c0_i32, %c0_i32_0 : i32, i32, i32
  }
  func.func @transform_16(%arg0: i32, %arg1: i32) -> (i32, i32, i32) {
    %c0_i32 = arith.constant 0 : i32
    %c0_i32_0 = arith.constant 0 : i32
    %c0_i32_1 = arith.constant 0 : i32
    return %arg1, %c0_i32, %c0_i32_0 : i32, i32, i32
  }
  func.func @transform_17(%arg0: i32, %arg1: i32) -> (i32, i32, i32) {
    %c0_i32 = arith.constant 0 : i32
    %c0_i32_0 = arith.constant 0 : i32
    %c0_i32_1 = arith.constant 0 : i32
    return %arg1, %c0_i32, %c0_i32_0 : i32, i32, i32
  }
  func.func @transform_18(%arg0: i32, %arg1: i32) -> (i32, i32, i32) {
    %c0_i32 = arith.constant 0 : i32
    %c0_i32_0 = arith.constant 0 : i32
    %c0_i32_1 = arith.constant 0 : i32
    return %arg0, %c0_i32, %c0_i32_0 : i32, i32, i32
  }
}

</mosaic_0001>

<bundles_post_ra>
// kernel: tpu_custom_call.1
= control target key start
LH: loop header
LB: loop body
LE: loop exit
PB: predicated region body
PF: predicated region fallthrough
CT: control target
= control target key end

     0   :  { %s3026_s0 = inlined_call_operand.hbm [shape: bf16[2,8,32], index: 0, kind: input, shape index: {}]   ;;  %s3027_s1 = inlined_call_operand.hbm [shape: f32[2,1,8], index: 1, kind: input, shape index: {}]   ;;  %s3028_s2 = inlined_call_operand.hbm [shape: f32[2,1,32], index: 2, kind: input, shape index: {}]   ;;  %s3029_s3 = inlined_call_operand.hbm [shape: f32[2,1,32], index: 3, kind: input, shape index: {}]   ;;  %s3030_s4 = inlined_call_operand.vmem [shape: bf16[2,32,32], index: 4, kind: input, shape index: {}]   ;;  %s3031_s5 = inlined_call_operand.vmem [shape: f32[2,1,32], index: 5, kind: input, shape index: {}]   ;;  %s3032_s6 = inlined_call_operand.vmem [shape: bf16[2,32,32], index: 6, kind: input, shape index: {}]   ;;  %s3033_s7 = inlined_call_operand.vmem [shape: f32[2,1,32], index: 7, kind: input, shape index: {}]   ;;  %s3034_s8 = inlined_call_operand.vmem [shape: bf16[2,32,32], index: 8, kind: input, shape index: {}]   ;;  %s3035_s9 = inlined_call_operand.vmem [shape: f32[2,1,32], index: 9, kind: input, shape index: {}]   ;;  %s3036_s10 = inlined_call_operand.vmem [shape: bf16[2,32,32], index: 10, kind: input, shape index: {}]   ;;  %s3037_s11 = inlined_call_operand.vmem [shape: f32[2,1,32], index: 11, kind: input, shape index: {}]   ;;  %s3038_s12 = inlined_call_operand.vmem [shape: f32[2,1,32], index: 12, kind: input, shape index: {}]   ;;  %s3039_s13 = inlined_call_operand.hbm [shape: f32[2,1,32], index: 13, kind: input, shape index: {}]   ;;  %s3040_s14 = inlined_call_operand.vmem [shape: bf16[2,32,128], index: 14, kind: input, shape index: {}]   ;;  %s3041_s15 = inlined_call_operand.vmem [shape: f32[2,1,128], index: 15, kind: input, shape index: {}]   ;;  %s3042_s16 = inlined_call_operand.vmem [shape: bf16[2,128,32], index: 16, kind: input, shape index: {}]   ;;  %s3043_s17 = inlined_call_operand.vmem [shape: f32[2,1,32], index: 17, kind: input, shape index: {}]   ;;  %s3044_s18 = inlined_call_operand.hbm [shape: f32[2,8,32], index: 18, kind: output, shape index: {}]  }
   0x1   :  { %3064 = sst [smem:[#allocation34_spill]] %s3026_s0 }
   0x2   :  { %3065 = sst [smem:[#allocation35_spill]] %s3027_s1 }
   0x3   :  { %3066 = sst [smem:[#allocation36_spill]] %s3028_s2 }
   0x4   :  { %3067 = sst [smem:[#allocation37_spill]] %s3029_s3 }
   0x5   :  { %3068 = sst [smem:[#allocation38_spill]] %s3030_s4 }
   0x6   :  { %3069 = sst [smem:[#allocation39_spill]] %s3031_s5 }
   0x7   :  { %3070 = sst [smem:[#allocation40_spill]] %s3032_s6 }
   0x8   :  { %3071 = sst [smem:[#allocation41_spill]] %s3033_s7 }
   0x9   :  { %3072 = sst [smem:[#allocation42_spill]] %s3034_s8 }
   0xa   :  { %3073 = sst [smem:[#allocation43_spill]] %s3035_s9 }
   0xb   :  { %3074 = sst [smem:[#allocation44_spill]] %s3036_s10 }
   0xc   :  { %3075 = sst [smem:[#allocation45_spill]] %s3037_s11 }
   0xd   :  { %3076 = sst [smem:[#allocation46_spill]] %s3038_s12 }
   0xe   :  { %3077 = sst [smem:[#allocation47_spill]] %s3039_s13 }
   0xf   :  { %3078 = sst [smem:[#allocation48_spill]] %s3040_s14 }
  0x10   :  { %3079 = sst [smem:[#allocation49_spill]] %s3041_s15 }
  0x11   :  { %3080 = sst [smem:[#allocation50_spill]] %s3042_s16 }
  0x12   :  { %3081 = sst [smem:[#allocation51_spill]] %s3043_s17 }
  0x13   :  { %3082 = sst [smem:[#allocation52_spill]] %s3044_s18 }
  0x14   :  { %23 = vsyncpa [#allocation3], 0 }
  0x15   :  { %25 = vsyncpa [#allocation3 + $0x1], 0 }
  0x16   :  { %26 = vsyncpa [#allocation6], 0 }
  0x17   :  { %28 = vsyncpa [#allocation6 + $0x1], 0 }
  0x18   :  { %29 = vsyncpa [#allocation9], 0 }
  0x19   :  { %31 = vsyncpa [#allocation9 + $0x1], 0 }
  0x1a   :  { %32 = vsyncpa [#allocation4], 0 }
  0x1b   :  { %34 = vsyncpa [#allocation4 + $0x1], 0  ;;  %s2556_s27 = smov 0   ;;  %s2558_s28 = smov 0  }
  0x1c   :  { %s2560_s29 = smov 0   ;;  %s2562_s30 = smov 0  }
  0x1d   :  { %s2564_s0 = smov 0   ;;  %s2566_s19 = smov 0  }
  0x1e   :  { %s2568_s1 = smov 0   ;;  %s2570_s20 = smov 0  }
  0x1f   :  { %s2572_s21 = smov 0   ;;  %s2574_s22 = smov 0  }
  0x20   :  { %s2576_s2 = smov 0  }
  0x21 LB: > { %3083 = sst [smem:[#allocation17_spill]] %s2415_s28  ;;  %s2612_s23 = sadd.s32 4294967295, %s2451_s2   ;;  %s2451_s2 = sphi %s2576_s2, %s40_s2   ;;  %s2447_s22 = sphi %s2574_s22, %s3163_s22   ;;  %s2443_s21 = sphi %s2572_s21, %s3162_s21   ;;  %s2439_s20 = sphi %s2570_s20, %s3161_s20   ;;  %s2435_s1 = sphi %s2568_s1, %s3160_s1   ;;  %s2431_s19 = sphi %s2566_s19, %s3159_s19   ;;  %s2427_s0 = sphi %s2564_s0, %s3158_s0   ;;  %s2423_s30 = sphi %s2562_s30, %s3157_s30   ;;  %s2419_s29 = sphi %s2560_s29, %s3156_s29   ;;  %s2415_s28 = sphi %s2558_s28, %s3155_s28   ;;  %s2411_s27 = sphi %s2556_s27, %s3154_s27  }
  0x22   : > { %3084 = sst [smem:[#allocation18_spill]] %s2419_s29  ;;  %s1869_s24 = sadd.s32 4294967294, %s2451_s2  }
  0x23   : > { %3085 = sst [smem:[#allocation19_spill]] %s2423_s30  ;;  %p66_p0 = scmp.ne.s32.totalorder %s2431_s19, %s2427_s0 }
  0x24   : > { %3086 = sst [smem:[#allocation20_spill]] %s2427_s0  ;;  %p67_p1 = scmp.eq.s32.totalorder %s2451_s2, 0 }
  0x25   : > { %3087 = sst [smem:[#allocation21_spill]] %s2431_s19  ;;  %p72_p2 = scmp.ne.s32.totalorder %s2427_s0, %s2423_s30 }
  0x26   : > { %3088 = sst [smem:[#allocation22_spill]] %s2435_s1  ;;  %p73_p3 = scmp.eq.s32.totalorder %s2612_s23, 0 }
  0x27   : > { %3089 = sst [smem:[#allocation23_spill]] %s2439_s20  ;;  %p68_p4 = por %p67_p1, %p66_p0 }
  0x28   : > { %3090 = sst [smem:[#allocation24_spill]] %s2443_s21  ;;  %p538_p5 = scmp.eq.s32.totalorder %s2612_s23, 3 }
  0x29   : > { %3091 = sst [smem:[#allocation25_spill]] %s2447_s22  ;;  %p2628_p6 = por %p73_p3, %p72_p2 }
  0x2a   : > { %3092 = sst [smem:[#allocation26_spill]] %s2451_s2  ;;  %p544_p7 = scmp.eq.s32.totalorder %s1869_s24, 3 }
  0x2b   : > { %p2632_p8 = por %p538_p5, %p66_p0  ;;  %p3050_p10 = scmp.lt.s32.totalorder %s2451_s2, 4 }
  0x2c   : > { %p2636_p9 = por %p544_p7, %p72_p2  ;;  %s2642_s30 = sand.u32 1, %s2431_s19  }
  0x2d   : > { %s3094_s25 = scalar_select %p2632_p8, 1, 0 }
  0x2e   : > { %s3096_s26 = scalar_select %p2636_p9, 1, 0 }
  0x2f   : > { %3095 = sst [smem:[#allocation27_spill]] %s3094_s25  ;;  %p2647_p11 = pnand %p3050_p10, %p68_p4 }
  0x30   : > { %3097 = sst [smem:[#allocation28_spill]] %s3096_s26  ;;  %s586_s20 = scalar_lea.vmem [#allocation5], %s2642_s30 }
  0x31   : > { %s3099_s17 = sld [smem:[#allocation35_spill]]  ;;  %s593_s14 = sshll.u32 %s586_s20, 4  ;;  %s594_s14 = int_to_ptr.vmem [resolvable:$true] %s593_s14 }
  0x32   : > { %p1874_p12 = scmp.ge.s32.totalorder %s2451_s2, 1  ;;  %s3100_s12 = sand.u32 1, %s2451_s2  }
  0x33   : > { %s2659_s11 = scalar_lea.sflag [#allocation6], %s3100_s12  ;;  %p739_p13 = scmp.lt.s32.totalorder %s2451_s2, 5 }
  0x34   : > { %s111_s20 = sadd.s32 1, %s2419_s29  ;;  %p118_p4 = scmp.ne.s32.totalorder %s2419_s29, %s2415_s28 }
  0x35   : > { %p2665_p0 = pnand %p1874_p12, %p739_p13  ;;  %p124_p5 = scmp.ne.s32.totalorder %s2415_s28, %s2411_s27 }
  0x36   : > { %s2676_s12 = sand.u32 1, %s2419_s29   ;;  %p120_p7 = por %p118_p4, %p67_p1 }
  0x37   : > { %s589_s26 = scalar_lea.hbm %s3099_s17, %s2447_s22  ;;  %s49_s17 = sadd.s32 1, %s2443_s21 }
  0x38   : > { %s591_s15 = sshll.u32 %s589_s26, 4  ;;  %p50_p2 = scmp.ge.s32.totalorder %s49_s17, 2  ;;  %s592_s15 = int_to_ptr.hbm [resolvable:$true] %s591_s15 }
  0x39   : > { %2021 = dma.hbm_to_vmem [thread:$0]  (!%p2647_p11), %s592_s15, 16, %s594_s14, %s2659_s11  }
  0x3a   : > { %s3165_s17 = smov (%p50_p2, %s49_s17), 0  ;;  %s3103_s14 = sadd.s32 1, %s2447_s22 }
  0x3b   : > { %3102 = sst [smem:[#allocation29_spill]] %s3165_s17  ;;  %s3167_s14 = smov (!%p50_p2, %s3103_s14), %s2447_s22 }
  0x3c   : > { %s108_s15 = ssub.s32 %s2443_s21, %s3165_s17  ;;  %p54_p12 = scmp.ge.s32.totalorder %s3167_s14, 2 }
  0x3d   : > { %p109_p13 = scmp.eq.s32.totalorder %s108_s15, 0  ;;  %p2689_p10 = por %p124_p5, %p73_p3 }
  0x3e   : > { %p3105_p9 = scmp.lt.s32.totalorder %s2451_s2, 4  ;;  %s3169_s14 = smov (%p54_p12, %s3167_s14), 0 }
  0x3f   : > { %3107 = sst [smem:[#allocation30_spill]] %s3169_s14  ;;  %s56_s17 = ssub.s32 %s2447_s22, %s3169_s14 }
  0x40   : > { %p2695_p8 = pnand %p3105_p9, %p120_p7  ;;  %p57_p1 = scmp.eq.s32.totalorder %s56_s17, 0 }
  0x41   : > { %s2702_s26 = scalar_select %p109_p13, %s2419_s29, %s111_s20  }
  0x42   : > { %s3109_s3 = sld [smem:[#allocation37_spill]]  ;;  %s3110_s8 = sadd.s32 1, %s2431_s19 }
  0x43   : > { %3108 = sst [smem:[#allocation31_spill]] %s2702_s26  ;;  %s620_s4 = scalar_lea.vmem [#allocation8], %s2676_s12 }
  0x44   : > { %s2713_s7 = scalar_select %p57_p1, %s2431_s19, %s3110_s8  }
  0x45   : > { %s627_s5 = sshll.u32 %s620_s4, 4  ;;  %s3112_s20 = sand.u32 1, %s2451_s2   ;;  %s628_s5 = int_to_ptr.vmem [resolvable:$true] %s627_s5 }
  0x46   : > { %3111 = sst [smem:[#allocation32_spill]] %s2713_s7  ;;  %s618_s26 = scalar_lea.sflag [#allocation9], %s3112_s20 }
  0x47   : > { %s1872_s17 = sshll.u32 %s2642_s30, 2  ;;  %s1873_s10 = sshll.u32 %s2447_s22, 2 }
  0x48   : > { %s623_s9 = scalar_lea.hbm %s3109_s3, %s2443_s21  ;;  %s3113_s3 = sld [smem:[#allocation34_spill]] }
  0x49   : > { %s625_s6 = sshll.u32 %s623_s9, 4  ;;  %s568_s14 = scalar_lea.vmem [#allocation2], %s1872_s17  ;;  %s626_s6 = int_to_ptr.hbm [resolvable:$true] %s625_s6 }
  0x4a   : > { %2027 = dma.hbm_to_vmem [thread:$0]  (!%p2695_p8), %s626_s6, 16, %s628_s5, %s618_s26  }
  0x4b   : > { %s576_s7 = sshll.u32 %s568_s14, 4  ;;  %s565_s19 = scalar_lea.sflag [#allocation3], %s2642_s30  ;;  %s577_s7 = int_to_ptr.vmem [resolvable:$true] %s576_s7 }
  0x4c   : > { %s3114_s20 = sld [smem:[#allocation36_spill]]  ;;  %s603_s22 = scalar_lea.vmem [#allocation7], %s2676_s12 }
  0x4d   : > { %s610_s2 = sshll.u32 %s603_s22, 4  ;;  %s3115_s13 = sld [smem:[#allocation47_spill]]  ;;  %s611_s2 = int_to_ptr.vmem [resolvable:$true] %s610_s2 }
  0x4e   : > { %s572_s9 = scalar_lea.hbm %s3113_s3, %s1873_s10  ;;  %s699_s10 = scalar_lea.vmem [#allocation10], %s2676_s12 }
  0x4f   : > { %s574_s4 = sshll.u32 %s572_s9, 4  ;;  %s706_s15 = sshll.u32 %s699_s10, 4  ;;  %s575_s4 = int_to_ptr.hbm [resolvable:$true] %s574_s4  ;;  %s707_s15 = int_to_ptr.vmem [resolvable:$true] %s706_s15 }
  0x50   : > { %2018 = dma.hbm_to_vmem [thread:$0]  (!%p2647_p11), %s575_s4, 64, %s577_s7, %s565_s19  }
  0x52   : > { %s606_s29 = scalar_lea.hbm %s3114_s20, %s2443_s21  ;;  %743 = sbr.rel (%p2665_p0) target bundleno = 2024 (0x7e8), region = 92 }
  0x53   : > { %s608_s1 = sshll.u32 %s606_s29, 4  ;;  %s702_s17 = scalar_lea.hbm %s3115_s13, %s2443_s21  ;;  %s609_s1 = int_to_ptr.hbm [resolvable:$true] %s608_s1 }
  0x54   : > { %2024 = dma.hbm_to_vmem [thread:$0]  (!%p2695_p8), %s609_s1, 16, %s611_s2, %s2659_s11  }
  0x55   : > { %s704_s30 = sshll.u32 %s702_s17, 4  ;;  %s705_s30 = int_to_ptr.hbm [resolvable:$true] %s704_s30 }
  0x56   : > { %2030 = dma.hbm_to_vmem [thread:$0]  (!%p2695_p8), %s705_s30, 16, %s707_s15, %s618_s26  }
  0x57   : > { %s2746_s7 = sand.u32 1, %s2427_s0  }
  0x58   : > { %s1875_s11 = sshll.u32 %s2746_s7, 2  ;;  %s746_s29 = scalar_lea.sflag [#allocation3], %s2746_s7 }
  0x59   : > { %s2750_s19 = scalar_lea.vmem [#allocation2], %s1875_s11 }
  0x5a   : > { %2390 = dma.done.wait (%p2628_p6), %s746_s29, 64  }
  0x5b   : > { %2392 = vsyncadd (%p2628_p6), %s746_s29, 4294967232  ;;  %s755_s1 = sand.u32 1, %s2612_s23  }
  0x5c   : > { %s756_s22 = scalar_lea.sflag [#allocation6], %s755_s1 }
  0x5d   : > { %2394 = dma.done.wait (%p2628_p6), %s756_s22, 16  }
  0x5e   : > { %2396 = vsyncadd (%p2628_p6), %s756_s22, 4294967280  ;;  %s2763_s24 = sand.u32 1, %s2415_s28  }
  0x5f   : > { %2398 = dma.done.wait (%p2689_p10), %s756_s22, 16  }
  0x60   : > { %2400 = vsyncadd (%p2689_p10), %s756_s22, 4294967280  ;;  %s774_s23 = scalar_lea.sflag [#allocation9], %s755_s1 }
  0x61   : > { %2402 = dma.done.wait (%p2689_p10), %s774_s23, 32  }
  0x62   : > { %2404 = vsyncadd (%p2689_p10), %s774_s23, 4294967264  ;;  %s3116_s18 = sld [smem:[#allocation22_spill]]  ;;  %s1876_s27 = sshll.u32 %s2746_s7, 3 }
  0x63   : > { %s3118_s3 = sld [smem:[#allocation38_spill]]  ;;  %s785_s11 = scalar_lea.vmem [#allocation10], %s2763_s24 }
  0x64   : > { %s3119_s15 = sld [smem:[#allocation40_spill]]  ;;  %s2841_s29 = scalar_lea.vmem [#allocation11], %s1876_s27 }
  0x65   : > { %s3121_s12 = sld [smem:[#allocation42_spill]] }
  0x66   : > { %s3123_s5 = sld [smem:[#allocation44_spill]] }
  0x67   : > { %s3126_s1 = sld [smem:[#allocation46_spill]] }
  0x68   : > { %p906_p3 = scmp.lt.s32.totalorder %s3116_s18, 1  ;;  %s3127_s23 = sld [smem:[#allocation48_spill]] }
  0x69   : > { %s3128_s4 = sld [smem:[#allocation49_spill]]  ;;  %p1889_p6 = scmp.ne.s32.totalorder %s3116_s18, 0 }
  0x6a   : > { %s2778_s26 = scalar_select %p906_p3, %s3116_s18, 1 }
  0x6b   : > { %s3129_s28 = sld [smem:[#allocation51_spill]] }
  0x6c   : > { %s1979_s8 = sshll.u32 %s2778_s26, 4  ;;  %s1984_s20 = sshll.u32 %s2778_s26, 6 }
  0x6d   : > { %s2788_s14 = scalar_lea.vmem %s3118_s3, %s1979_s8  ;;  %s2793_s30 = scalar_lea.vmem %s3119_s15, %s1979_s8 }
  0x6e   : > { %s2802_s16 = scalar_lea.vmem %s3121_s12, %s1979_s8  ;;  %s2811_s13 = scalar_lea.vmem %s3123_s5, %s1979_s8 }
  0x6f   : > { %3124 = sst [smem:[#allocation33_spill]] %s2811_s13  ;;  %s940_s22 = scalar_lea.vmem %s3126_s1, %s2778_s26 }
  0x70   : > { %s2824_s0 = scalar_lea.vmem %s3127_s23, %s1979_s8  ;;  %s948_s6 = scalar_lea.vmem %s3128_s4, %s2778_s26 }
  0x71   : > { %s956_s13 = scalar_lea.vmem %s3129_s28, %s2778_s26  ;;  %s3130_s15 = sld [smem:[#allocation50_spill]] }
  0x73   : > { %961 = sbr.rel (%p1889_p6) target bundleno = 124 (0x7c), region = 116 }
  0x77   : > { %s2838_s21 = scalar_lea.vmem %s3130_s15, %s1984_s20 }
  0x78   : > { %v962_v0 = vld [vmem:[%s2750_s19] sm:$0xf]  ;;  %vm964_vm0 = vcmask 261120  }
  0x79   : > { %v963_v1 = vunpack.c.l.bf16 %v962_v0 }
  0x7b   : > { %965 = vst.msk [vmem:[%s2841_s29] sm:$0xff] %vm964_vm0, %v963_v1 }
  0x7c PF: > { %vm972_vm1 = vcmask 261120   ;;  %v2453_v4 = vmov 32.0   ;;  %v1986_v16 = vld [vmem:[%s2788_s14 + $0x8] sm:$0xff]  ;;  %v1985_v18 = vld [vmem:[%s2788_s14] sm:$0xff]  ;;  %s3131_s28 = scalar_lea.vmem [#allocation7], %s2763_s24  ;;  %s3132_s19 = scalar_lea.vmem [#allocation8], %s2763_s24 }
  0x7d   : > { %2143 = vrcp.f32 %v2453_v4  ;;  %v1988_v17 = vld [vmem:[%s2793_s30 + $0x8] sm:$0xff]  ;;  %1040 = vmatpush.bf16.msra.mxu0 %v1986_v16  ;;  %v1987_v19 = vld [vmem:[%s2793_s30] sm:$0xff]  ;;  %s3133_s27 = sld [smem:[#allocation39_spill]]  ;;  %vm1120_vm6 = vcmask 64512   ;;  %s2454_s12 = smov 112   ;;  %vm1155_vm7 = vcmask 1043456  }
  0x7e   : > { %1073 = vmatpush.bf16.msra.mxu2 %v1988_v17  ;;  %v1990_v20 = vld [vmem:[%s2802_s16 + $0x8] sm:$0xff]  ;;  %v1989_v23 = vld [vmem:[%s2802_s16] sm:$0xff]  ;;  %s3135_s1 = sld [smem:[#allocation41_spill]]  ;;  %s2455_s23 = smov 120   ;;  %vm1362_vm9 = vcmask 130048   ;;  %vm1364_vm10 = vcmask 195584  }
  0x7f   : > { %v2133_v31 = vld [vmem:[%s3131_s28] ss:$0 sm:$0xff]  ;;  %s3137_s4 = sld [smem:[#allocation43_spill]]  ;;  %s2456_s5 = smov 104  }
  0x80   : > { %v2134_v34 = vld [vmem:[%s3132_s19] ss:$0 sm:$0xff]  ;;  %s3139_s3 = scalar_lea.vmem [#allocation5], %s2746_s7  ;;  %s3140_s17 = sld [smem:[#allocation33_spill]] }
  0x81   : > { %1041 = vmatpush.bf16.msra.mxu0 %v1985_v18  ;;  %s2458_s10 = smov 8   ;;  %s2459_s15 = smov 16  }
  0x82   : > { %v2847_v2 = vld [vmem:[%s2841_s29] sm:$0xff]  ;;  %1074 = vmatpush.bf16.msra.mxu2 %v1987_v19  ;;  %s2460_s28 = smov 24   ;;  %s3141_s18 = sld [smem:[#allocation45_spill]] }
  0x83   : > { %v973_v3 = vsel %vm972_vm1, %v2847_v2, 0.0  ;;  %v2144_v5 = vpop.eup %2143  ;;  %s3134_s8 = scalar_lea.vmem %s3133_s27, %s2778_s26  ;;  %s3145_s30 = sld [smem:[#allocation23_spill]] }
  0x84   : > { %974 = vadd.xlane.f32.xlu0 %v973_v3  ;;  %v977_v6 = vmul.f32 32.0, %v2144_v5  ;;  %vm981_vm2 = vweird.f32 %v2144_v5  ;;  %v2135_v38 = vld [vmem:[%s3134_s8] ss:$0 sm:$0xff]  ;;  %s3136_s2 = scalar_lea.vmem %s3135_s1, %s2778_s26  ;;  %s3148_s9 = sld [smem:[#allocation52_spill]] }
  0x85   : > { %v2136_v42 = vld [vmem:[%s3136_s2] ss:$0 sm:$0xff]  ;;  %s3138_s20 = scalar_lea.vmem %s3137_s4, %s2778_s26 }
  0x86   : > { %v978_v7 = vsub.f32 1.0, %v977_v6  ;;  %1106 = vmatpush.bf16.msrb.mxu2 %v1990_v20  ;;  %v2137_v54 = vld [vmem:[%s3138_s20] ss:$0 sm:$0xff]  ;;  %v2457_v6 = vmov 0.0   ;;  %s1579_s20 = sshll.u32 %s2841_s29, 4  ;;  %s1580_s20 = int_to_ptr.vmem [resolvable:$true] %s1579_s20 }
  0x88   : > { %v979_v8 = vmul.f32 %v2144_v5, %v978_v7  ;;  %s3142_s27 = scalar_lea.vmem %s3141_s18, %s2778_s26 }
  0x8a   : > { %v980_v9 = vadd.f32 %v2144_v5, %v979_v8  ;;  %1107 = vmatpush.bf16.msrb.mxu2 %v1989_v23 }
  0x8c   : > { %v2851_v10 = vsel %vm981_vm2, %v2144_v5, %v980_v9  ;;  %v967_v5 = vld [vmem:[%s3139_s3] sm:$0x1]  ;;  %s1567_s3 = scalar_lea.sflag [#allocation4], %s2746_s7 }
  0x8d   : > { %vm968_vm8 = vcmp.eq.f32.partialorder %v967_v5, 0.0 }
  0x8e   : > { %v969_v7 = vsel %vm968_vm8, -1e+09, %v2457_v6 }
  0x8f   : > { %v1118_v8 = vperm.slane %v969_v7, 0 }
  0xf7   : > { %v975_v11 = vpop.xlane.xlu0 %974 }
  0xf8   : > { %v983_v12 = vmul.f32 %v2851_v10, %v975_v11 }
  0xfa   : > { %v984_v13 = vsub.f32 %v2847_v2, %v983_v12 }
  0xfc   : > { %v985_v14 = vmul.f32 %v984_v13, %v984_v13 }
  0xfe   : > { %v986_v15 = vsel %vm972_vm1, %v985_v14, 0.0 }
  0xff   : > { %987 = vadd.xlane.f32.xlu0 %v986_v15 }
 0x172   : > { %v988_v21 = vpop.xlane.xlu0 %987 }
 0x173   : > { %v989_v22 = vmul.f32 %v988_v21, %v2851_v10 }
 0x175   : > { %v990_v24 = vadd.f32 1e-05, %v989_v22 }
 0x177   : > { %2145 = vrsqrt.f32 %v990_v24  ;;  %vm997_vm4 = vweird.f32 %v990_v24 }
 0x17d   : > { %v2146_v25 = vpop.eup %2145 }
 0x17e   : > { %v992_v26 = vmul.f32 %v2146_v25, %v990_v24  ;;  %vm998_vm3 = vweird.f32 %v2146_v25 }
 0x17f   : > { %vm999_vm5 = vmor %vm997_vm4, %vm998_vm3 }
 0x180   : > { %v993_v27 = vmul.f32 %v2146_v25, %v992_v26 }
 0x182   : > { %v994_v28 = vmul.f32 0.5, %v993_v27 }
 0x184   : > { %v995_v29 = vsub.f32 1.5, %v994_v28 }
 0x186   : > { %v996_v30 = vmul.f32 %v2146_v25, %v995_v29 }
 0x188   : > { %v1000_v32 = vsel %vm999_vm5, %v2146_v25, %v996_v30 }
 0x189   : > { %v1001_v33 = vmul.f32 %v1000_v32, %v984_v13 }
 0x18b   : > { %v1005_v35 = vmul.f32 %v2133_v31, %v1001_v33 }
 0x18d   : > { %v1009_v36 = vadd.f32 %v2134_v34, %v1005_v35 }
 0x18f   : > { %v1010_v37 = vpack.c.bf16 %v1009_v36, %v1009_v36 }
 0x191   : > { %1898 = vmatmul.msk.bf16.vlgmr.msra.gmra.mxu0 %vm972_vm1, %v1010_v37  ;;  %1907 = vmatmul.msk.bf16.vlgmr.msra.gmra.mxu2 %vm972_vm1, %v1010_v37 }
 0x1a1   : > { %1916 = vmatmul.msk.bf16.vlgmr.msrb.gmra.mxu2 %vm972_vm1, %v1010_v37 }
 0x20e   : > { %v1043_v39 = vpop.f32.mrf.mxu0 }
 0x20f   : > { %v1044_v40 = vadd.f32 %v2135_v38, %v1043_v39 }
 0x211   : > { %v1113_v41 = vmul.f32 0.35355338, %v1044_v40 }
 0x213   : > { %v1114_v43 = vpack.c.bf16 %v1113_v41, %v1113_v41 }
 0x214   : > { %v1076_v44 = vpop.f32.mrf.mxu2 }
 0x215   : > { %v1173_v45 = vunpack.c.l.b16 %v1114_v43  ;;  %v1077_v46 = vadd.f32 %v2136_v42, %v1076_v44 }
 0x216   : > { %v1045_v47 = vpop.f32.mrf.mxu0 }
 0x217   : > { %v1115_v48 = vpack.c.bf16 %v1077_v46, %v1077_v46  ;;  %v1174_v49 = vpack.c.b16 %v1173_v45, %v1173_v45 }
 0x219   : > { %v1178_v50 = vunpack.c.l.b16 %v1115_v48  ;;  %1237 = vrot.lane.b32.xlu0 %v1174_v49, %s2454_s12  ;;  %v1125_v51 = vsel %vm1120_vm6, %v1115_v48, 0 }
 0x21a   : > { %1134 = vmatpush.bf16.xpose.msra.mxu3 %v1125_v51 }
 0x21b   : > { %v1179_v52 = vpack.c.b16 %v1178_v50, %v1178_v50 }
 0x21c   : > { %v1078_v53 = vpop.f32.mrf.mxu2 }
 0x21d   : > { %1239 = vrot.lane.b32.xlu2 %v1179_v52, %s2454_s12  ;;  %1180 = vrot.lane.b32.xlu1 %v1179_v52, %s2455_s23 }
 0x221   : > { %1917 = vmatmul.msk.bf16.vlgmr.msra.gmra.mxu3 %vm1120_vm6, %v1114_v43 }
 0x224   : > { %v1109_v55 = vpop.f32.mrf.mxu2 }
 0x225   : > { %v1110_v56 = vadd.f32 %v2137_v54, %v1109_v55  ;;  %1295 = vrot.lane.b32.xlu2 %v1179_v52, %s2456_s5  ;;  %1175 = vrot.lane.b32.xlu1 %v1174_v49, %s2455_s23 }
 0x227   : > { %v2892_v57 = vpack.c.bf16 %v1110_v56, %v1110_v56 }
 0x229   : > { %v1157_v58 = vsel %vm1155_vm7, %v2892_v57, 0  ;;  %v1214_v51 = vunpack.c.l.b16 %v2892_v57 }
 0x22a   : > { %1166 = vmatpush.bf16.msrb.mxu0 %v1157_v58 }
 0x22b   : > { %v1215_v52 = vpack.c.b16 %v1214_v51, %v1214_v51 }
 0x22c   : > { %v1111_v59 = vpop.f32.mrf.mxu2 }
 0x22d   : > { %1293 = vrot.lane.b32.xlu1 %v1174_v49, %s2456_s5 }
 0x277   : > { %v1240_v60 = vpop.permute.xlu2 %1239 }
 0x278   : > { %v1245_v61 = vsel %vm1120_vm6, %v1240_v60, 0 }
 0x279   : > { %1254 = vmatpush.bf16.xpose.msrb.mxu3 %v1245_v61 }
 0x27f   : > { %v1296_v63 = vpop.permute.xlu2 %1295 }
 0x280   : > { %v1301_v3 = vsel %vm1120_vm6, %v1296_v63, 0 }
 0x28b   : > { %v1238_v62 = vpop.permute.xlu0 %1237 }
 0x28c   : > { %1921 = vmatmul.msk.bf16.vlgmr.msrb.gmra.mxu3 %vm1120_vm6, %v1238_v62 }
 0x28f   : > { %v1181_v0 = vpop.permute.xlu1 %1180 }
 0x290   : > { %v1186_v1 = vsel %vm1120_vm6, %v1181_v0, 0 }
 0x291   : > { %1195 = vmatpush.bf16.xpose.msra.mxu1 %v1186_v1 }
 0x297   : > { %v1176_v4 = vpop.permute.xlu1 %1175 }
 0x298   : > { %1919 = vmatmul.msk.bf16.vlgmr.msra.gmra.mxu1 %vm1120_vm6, %v1176_v4 }
 0x299   : > { %1310 = vmatpush.bf16.xpose.msrb.mxu1 %v1301_v3 }
 0x29f   : > { %v1294_v12 = vpop.permute.xlu1 %1293 }
 0x2a4   : > { %v1136_v9 = vpop.f32.mrf.mxu3 }
 0x2a5   : > { %v1137_v11 = vadd.f32 %v1136_v9, %v1118_v8 }
 0x2a7   : > { %v1140_v13 = vsel %vm1120_vm6, %v1137_v11, -inf }
 0x2a8   : > { %1923 = vmatmul.msk.bf16.vlgmr.msrb.gmra.mxu1 %vm1120_vm6, %v1294_v12  ;;  %1141 = vmax.xlane.f32.xlu1 %v1140_v13 }
 0x2ac   : > { %v1138_v14 = vpop.f32.mrf.mxu3 }
 0x30f   : > { %v1256_v15 = vpop.f32.mrf.mxu3 }
 0x310   : > { %v1257_v21 = vadd.f32 %v1256_v15, %v1118_v8 }
 0x312   : > { %v1260_v25 = vsel %vm1120_vm6, %v1257_v21, -inf }
 0x315   : > { %v1197_v16 = vpop.f32.mrf.mxu1 }
 0x316   : > { %v1198_v17 = vadd.f32 %v1197_v16, %v1118_v8 }
 0x317   : > { %v1258_v18 = vpop.f32.mrf.mxu3 }
 0x318   : > { %v1201_v19 = vsel %vm1120_vm6, %v1198_v17, -inf  ;;  %v1991_v18 = vld [vmem:[%s3140_s17] sm:$0xff] }
 0x319   : > { %1202 = vmax.xlane.f32.xlu2 %v1201_v19 }
 0x31b   : > { %v1142_v20 = vpop.xlane.xlu1 %1141 }
 0x31c   : > { %v1143_v22 = vsub.f32 %v1137_v11, %v1142_v20 }
 0x31d   : > { %v1199_v23 = vpop.f32.mrf.mxu1 }
 0x31e   : > { %v1144_v24 = vmul.f32 1.442695, %v1143_v22 }
 0x320   : > { %2147 = vpow2.f32 %v1144_v24 }
 0x321   : > { %1261 = vmax.xlane.f32.xlu2 %v1260_v25 }
 0x325   : > { %v1312_v26 = vpop.f32.mrf.mxu1 }
 0x326   : > { %v2148_v27 = vpop.eup %2147  ;;  %v1313_v28 = vadd.f32 %v1312_v26, %v1118_v8  ;;  %v2138_v26 = vld [vmem:[%s3142_s27] ss:$0 sm:$0xff] }
 0x327   : > { %v1146_v29 = vsel %vm1120_vm6, %v2148_v27, 0.0 }
 0x328   : > { %1147 = vadd.xlane.f32.xlu1 %v1146_v29  ;;  %v1316_v30 = vsel %vm1120_vm6, %v1313_v28, -inf }
 0x329   : > { %1317 = vmax.xlane.f32.xlu0 %v1316_v30 }
 0x32d   : > { %v1314_v31 = vpop.f32.mrf.mxu1 }
 0x38c   : > { %v1203_v32 = vpop.xlane.xlu2 %1202 }
 0x38d   : > { %v1204_v33 = vsub.f32 %v1198_v17, %v1203_v32  ;;  %v1992_v17 = vld [vmem:[%s3140_s17 + $0x8] sm:$0xff] }
 0x38e   : > { %1396 = vmatpush.bf16.msra.mxu3 %v1992_v17 }
 0x38f   : > { %v1205_v34 = vmul.f32 1.442695, %v1204_v33 }
 0x391   : > { %2149 = vpow2.f32 %v1205_v34 }
 0x392   : > { %1397 = vmatpush.bf16.msra.mxu3 %v1991_v18 }
 0x394   : > { %v1262_v35 = vpop.xlane.xlu2 %1261 }
 0x395   : > { %v1263_v36 = vsub.f32 %v1257_v21, %v1262_v35 }
 0x397   : > { %v2150_v37 = vpop.eup %2149  ;;  %v1264_v38 = vmul.f32 1.442695, %v1263_v36 }
 0x398   : > { %v1207_v39 = vsel %vm1120_vm6, %v2150_v37, 0.0 }
 0x399   : > { %2151 = vpow2.f32 %v1264_v38  ;;  %1208 = vadd.xlane.f32.xlu2 %v1207_v39  ;;  %v1993_v38 = vld [vmem:[%s2824_s0] sm:$0xff] }
 0x39b   : > { %v1148_v40 = vpop.xlane.xlu1 %1147 }
 0x39c   : > { %2153 = vrcp.f32 %v1148_v40  ;;  %v1318_v41 = vpop.xlane.xlu0 %1317 }
 0x39d   : > { %v1319_v42 = vsub.f32 %v1313_v28, %v1318_v41 }
 0x39f   : > { %v2152_v43 = vpop.eup %2151  ;;  %v1320_v44 = vmul.f32 1.442695, %v1319_v42 }
 0x3a0   : > { %v1266_v45 = vsel %vm1120_vm6, %v2152_v43, 0.0 }
 0x3a1   : > { %2155 = vpow2.f32 %v1320_v44  ;;  %1267 = vadd.xlane.f32.xlu0 %v1266_v45 }
 0x3a2   : > { %v2154_v46 = vpop.eup %2153 }
 0x3a3   : > { %v1150_v47 = vmul.f32 %v2154_v46, %v2148_v27 }
 0x3a5   : > { %v1151_v48 = vpack.c.bf16 %v1150_v47, %v1150_v47 }
 0x3a7   : > { %v2156_v49 = vpop.eup %2155  ;;  %1918 = vmatmul.msk.bf16.vlgmr.msrb.gmra.mxu0 %vm1120_vm6, %v1151_v48 }
 0x3a8   : > { %v1322_v50 = vsel %vm1120_vm6, %v2156_v49, 0.0 }
 0x3a9   : > { %1323 = vadd.xlane.f32.xlu1 %v1322_v50  ;;  %v2140_v50 = vld [vmem:[%s785_s11] ss:$0 sm:$0xff] }
 0x3b1   : > { %1216 = vrot.lane.b32.xlu2 %v1215_v52, %s2455_s23 }
 0x3b5   : > { %1272 = vrot.lane.b32.xlu0 %v1215_v52, %s2454_s12  ;;  %s3147_s12 = sld [smem:[#allocation27_spill]] }
 0x3bb   : > { %p3149_p9 = scmp.ne.s32.totalorder %s3147_s12, 0 }
 0x3c2   : > { %1328 = vrot.lane.b32.xlu1 %v1215_v52, %s2456_s5 }
 0x40c   : > { %v1209_v53 = vpop.xlane.xlu2 %1208 }
 0x40d   : > { %2157 = vrcp.f32 %v1209_v53 }
 0x413   : > { %v2158_v54 = vpop.eup %2157 }
 0x414   : > { %v1211_v55 = vmul.f32 %v2158_v54, %v2150_v37  ;;  %v1217_v56 = vpop.permute.xlu2 %1216  ;;  %v1268_v60 = vpop.xlane.xlu0 %1267  ;;  %v1994_v37 = vld [vmem:[%s2824_s0 + $0x8] sm:$0xff]  ;;  %v2001_v54 = vld [vmem:[%s2838_s21 + $0x30] sm:$0xff] }
 0x415   : > { %v1222_v58 = vsel %vm1155_vm7, %v1217_v56, 0  ;;  %2159 = vrcp.f32 %v1268_v60  ;;  %v1999_v56 = vld [vmem:[%s2838_s21 + $0x20] sm:$0xff]  ;;  %v1996_v60 = vld [vmem:[%s2838_s21 + $0x8] sm:$0xff] }
 0x416   : > { %v1212_v59 = vpack.c.bf16 %v1211_v55, %v1211_v55  ;;  %1231 = vmatpush.bf16.msra.mxu2 %v1222_v58  ;;  %v2000_v55 = vld [vmem:[%s2838_s21 + $0x28] sm:$0xff]  ;;  %v1998_v58 = vld [vmem:[%s2838_s21 + $0x18] sm:$0xff] }
 0x419   : > { %1920 = vmatmul.msk.bf16.vlgmr.msra.gmra.mxu2 %vm1120_vm6, %v1212_v59  ;;  %v1997_v59 = vld [vmem:[%s2838_s21 + $0x10] sm:$0xff] }
 0x41b   : > { %v2160_v57 = vpop.eup %2159 }
 0x41c   : > { %v1270_v62 = vmul.f32 %v2160_v57, %v2152_v43  ;;  %v1324_v63 = vpop.xlane.xlu1 %1323  ;;  %v1995_v57 = vld [vmem:[%s2838_s21] sm:$0xff] }
 0x41d   : > { %2161 = vrcp.f32 %v1324_v63 }
 0x41e   : > { %v1271_v3 = vpack.c.bf16 %v1270_v62, %v1270_v62 }
 0x423   : > { %v2162_v5 = vpop.eup %2161 }
 0x424   : > { %v1168_v61 = vpop.f32.mrf.mxu0  ;;  %v1326_v6 = vmul.f32 %v2162_v5, %v2156_v49 }
 0x426   : > { %v1327_v9 = vpack.c.bf16 %v1326_v6, %v1326_v6 }
 0x427   : > { %v1273_v0 = vpop.permute.xlu0 %1272 }
 0x428   : > { %v1278_v1 = vsel %vm1155_vm7, %v1273_v0, 0 }
 0x429   : > { %1287 = vmatpush.bf16.msra.mxu0 %v1278_v1 }
 0x42c   : > { %v1170_v4 = vpop.f32.mrf.mxu0  ;;  %1922 = vmatmul.msk.bf16.vlgmr.msra.gmra.mxu0 %vm1120_vm6, %v1271_v3 }
 0x42d   : > { %1466 = vmatpush.bf16.msrb.mxu0 %v1994_v37 }
 0x431   : > { %1467 = vmatpush.bf16.msrb.mxu0 %v1993_v38 }
 0x434   : > { %v1329_v7 = vpop.permute.xlu1 %1328 }
 0x435   : > { %v1334_v8 = vsel %vm1155_vm7, %v1329_v7, 0 }
 0x436   : > { %1343 = vmatpush.bf16.msrb.mxu2 %v1334_v8 }
 0x439   : > { %1924 = vmatmul.msk.bf16.vlgmr.msrb.gmra.mxu2 %vm1120_vm6, %v1327_v9 }
 0x49c   : > { %v1233_v11 = vpop.f32.mrf.mxu2 }
 0x49d   : > { %1350 = vrot.lane.b32.xlu2 %v1233_v11, %s2458_s10 }
 0x4a4   : > { %v1235_v12 = vpop.f32.mrf.mxu2 }
 0x4a9   : > { %v1289_v13 = vpop.f32.mrf.mxu0 }
 0x4aa   : > { %1354 = vrot.lane.b32.xlu2 %v1289_v13, %s2459_s15  ;;  %v2142_v13 = vld [vmem:[%s956_s13] ss:$0 sm:$0xff]  ;;  %s2337_s15 = scalar_lea.hbm %s3148_s9, 16 }
 0x4b1   : > { %v1291_v14 = vpop.f32.mrf.mxu0 }
 0x4bc   : > { %v1345_v15 = vpop.f32.mrf.mxu2 }
 0x4bd   : > { %1358 = vrot.lane.b32.xlu0 %v1345_v15, %s2460_s28 }
 0x4c4   : > { %v1347_v16 = vpop.f32.mrf.mxu2 }
 0x4f7   : > { %v1351_v19 = vpop.permute.xlu2 %1350 }
 0x4f8   : > { %v1361_v21 = vsel %vm1120_vm6, %v1168_v61, %v1351_v19  ;;  %v2141_v61 = vld [vmem:[%s948_s6] ss:$0 sm:$0xff] }
 0x504   : > { %v1355_v20 = vpop.permute.xlu2 %1354 }
 0x505   : > { %v1363_v22 = vsel %vm1362_vm9, %v1361_v21, %v1355_v20 }
 0x52f   : > { %v1359_v23 = vpop.permute.xlu0 %1358 }
 0x530   : > { %v1365_v24 = vsel %vm1364_vm10, %v1363_v22, %v1359_v23 }
 0x531   : > { %v1366_v25 = vpack.c.bf16 %v1365_v24, %v1365_v24 }
 0x533   : > { %1933 = vmatmul.msk.bf16.vlgmr.msra.gmra.mxu3 %vm972_vm1, %v1366_v25 }
 0x5b6   : > { %v1399_v27 = vpop.f32.mrf.mxu3 }
 0x5b7   : > { %v1400_v28 = vadd.f32 %v2138_v26, %v1399_v27 }
 0x5b9   : > { %v2934_v29 = vadd.f32 %v1400_v28, %v2847_v2  ;;  %v2002_v2 = vld [vmem:[%s2838_s21 + $0x38] sm:$0xff]  ;;  %s1976_s21 = sshll.u32 %s3145_s30, 3 }
 0x5ba   : > { %1551 = vmatpush.bf16.msra.mxu1 %v2002_v2  ;;  %s1577_s4 = scalar_lea.hbm %s3148_s9, %s1976_s21 }
 0x5bb   : > { %v1406_v30 = vsel %vm972_vm1, %v2934_v29, 0.0  ;;  %s1581_s5 = sshll.u32 %s1577_s4, 4  ;;  %s1582_s5 = int_to_ptr.hbm [resolvable:$true] %s1581_s5 }
 0x5bc   : > { %1407 = vadd.xlane.f32.xlu1 %v1406_v30  ;;  %s2331_s17 = sshra.s32 %s1582_s5, 4  ;;  %s2332_s17 = int_to_ptr.hbm [resolvable:$true] %s2331_s17 }
 0x5bd   : > { %s2333_s26 = scalar_lea.hbm %s2332_s17, 8  ;;  %p2338_p0 = scmp.lt.s32.totalorder %s2332_s17, %s3148_s9 }
 0x5be   : > { %v1401_v31 = vpop.f32.mrf.mxu3  ;;  %1552 = vmatpush.bf16.msra.mxu1 %v2001_v54  ;;  %p2334_p8 = scmp.ne.s32.totalorder %s2332_s17, %s2333_s26  ;;  %p2339_p2 = scmp.lt.s32.totalorder %s2337_s15, %s2333_s26 }
 0x5c0   : > { %p2335_p10 = pnand %p2334_p8, %p3149_p9  ;;  %p2340_p4 = por %p2339_p2, %p2338_p0 }
 0x5c2   : > { %1553 = vmatpush.bf16.msra.mxu1 %v2000_v55  ;;  %p2336_p11 = pneg %p2335_p10 }
 0x5c4   : > { %p2341_p5 = pnand %p2340_p4, %p2336_p11 }
 0x5c6   : > { %1554 = vmatpush.bf16.msra.mxu1 %v1999_v56 }
 0x5ca   : > { %1555 = vmatpush.bf16.msra.mxu1 %v1998_v58 }
 0x5ce   : > { %1556 = vmatpush.bf16.msra.mxu1 %v1997_v59 }
 0x5d2   : > { %1557 = vmatpush.bf16.msra.mxu1 %v1996_v60 }
 0x5d6   : > { %1558 = vmatpush.bf16.msra.mxu1 %v1995_v57 }
 0x62f   : > { %v1408_v32 = vpop.xlane.xlu1 %1407 }
 0x630   : > { %v1409_v33 = vmul.f32 %v1408_v32, %v2851_v10 }
 0x632   : > { %v1410_v34 = vsub.f32 %v2934_v29, %v1409_v33 }
 0x634   : > { %v1411_v35 = vmul.f32 %v1410_v34, %v1410_v34 }
 0x636   : > { %v1412_v36 = vsel %vm972_vm1, %v1411_v35, 0.0 }
 0x637   : > { %1413 = vadd.xlane.f32.xlu2 %v1412_v36 }
 0x6aa   : > { %v1414_v39 = vpop.xlane.xlu2 %1413 }
 0x6ab   : > { %v1415_v40 = vmul.f32 %v1414_v39, %v2851_v10  ;;  %v2139_v10 = vld [vmem:[%s940_s22] ss:$0 sm:$0xff] }
 0x6ad   : > { %v1416_v41 = vadd.f32 1e-05, %v1415_v40 }
 0x6af   : > { %2163 = vrsqrt.f32 %v1416_v41  ;;  %vm1423_vm12 = vweird.f32 %v1416_v41 }
 0x6b5   : > { %v2164_v42 = vpop.eup %2163 }
 0x6b6   : > { %v1418_v43 = vmul.f32 %v2164_v42, %v1416_v41  ;;  %vm1424_vm11 = vweird.f32 %v2164_v42 }
 0x6b7   : > { %vm1425_vm13 = vmor %vm1423_vm12, %vm1424_vm11 }
 0x6b8   : > { %v1419_v44 = vmul.f32 %v2164_v42, %v1418_v43 }
 0x6ba   : > { %v1420_v45 = vmul.f32 0.5, %v1419_v44 }
 0x6bc   : > { %v1421_v46 = vsub.f32 1.5, %v1420_v45 }
 0x6be   : > { %v1422_v47 = vmul.f32 %v2164_v42, %v1421_v46 }
 0x6c0   : > { %v1426_v48 = vsel %vm1425_vm13, %v2164_v42, %v1422_v47 }
 0x6c1   : > { %v1427_v49 = vmul.f32 %v1426_v48, %v1410_v34 }
 0x6c3   : > { %v1431_v51 = vmul.f32 %v2139_v10, %v1427_v49 }
 0x6c5   : > { %v1435_v52 = vadd.f32 %v2140_v50, %v1431_v51 }
 0x6c7   : > { %v1436_v53 = vpack.c.bf16 %v1435_v52, %v1435_v52 }
 0x6c9   : > { %1942 = vmatmul.msk.bf16.vlgmr.msrb.gmra.mxu0 %vm972_vm1, %v1436_v53 }
 0x746   : > { %v1469_v62 = vpop.f32.mrf.mxu0 }
 0x747   : > { %v1470_v63 = vadd.f32 %v2141_v61, %v1469_v62 }
 0x749   : > { %v1473_v0 = vmul.f32 %v1470_v63, %v1470_v63 }
 0x74b   : > { %v1474_v1 = vmul.f32 %v1473_v0, %v1470_v63 }
 0x74d   : > { %v1475_v3 = vmul.f32 0.044715, %v1474_v1 }
 0x74e   : > { %v1471_v4 = vpop.f32.mrf.mxu0 }
 0x74f   : > { %v1476_v5 = vadd.f32 %v1475_v3, %v1470_v63 }
 0x751   : > { %v1477_v6 = vmul.f32 0.7978846, %v1476_v5 }
 0x753   : > { %2165 = vtanh.f32 %v1477_v6 }
 0x759   : > { %v2166_v7 = vpop.eup %2165 }
 0x75a   : > { %v1479_v8 = vadd.f32 1.0, %v2166_v7 }
 0x75c   : > { %v1480_v9 = vmul.f32 0.5, %v1479_v8 }
 0x75e   : > { %v1481_v11 = vmul.f32 %v1480_v9, %v1470_v63 }
 0x760   : > { %v1482_v12 = vpack.c.bf16 %v1481_v11, %v1481_v11 }
 0x762   : > { %1559 = vmatmul.bf16.vlgmr.msra.gmra.mxu1 %v1482_v12 }
 0x7df   : > { %v1560_v14 = vpop.f32.mrf.mxu1 }
 0x7e0   : > { %v1561_v15 = vadd.f32 %v2142_v13, %v1560_v14 }
 0x7e2   : > { %v1564_v16 = vadd.f32 %v1561_v15, %v2934_v29 }
 0x7e4   : > { %1565 = vst.msk [vmem:[%s2841_s29] sm:$0xff] %vm972_vm1, %v1564_v16 }
 0x7e5   : > { %2344 = shalt.err (!%p2341_p5)
}
 0x7e6   : > { %2013 = dma.vmem_to_hbm [thread:$0]  (%p3149_p9), %s1580_s20, 128, %s1582_s5, %s1567_s3  }
 0x7e7   : > { %v1562_v17 = vpop.f32.mrf.mxu1 }
 0x7e8 PF: > { %s3150_s7 = sld [smem:[#allocation26_spill]] }
 0x7e9   : > { %s3151_s29 = sld [smem:[#allocation19_spill]] }
 0x7ea   : > { %s3152_s16 = sld [smem:[#allocation28_spill]] }
 0x7ee   : > { %p2036_p7 = scmp.ge.s32.totalorder %s3150_s7, 2 }
 0x7ef   : > { %s1593_s18 = sand.u32 1, %s3151_s29  }
 0x7f0   : > { %p3153_p12 = scmp.ne.s32.totalorder %s3152_s16, 0  ;;  %s1594_s27 = scalar_lea.sflag [#allocation4], %s1593_s18 }
 0x7f2   : > { %p2032_p13 = pnand %p2036_p7, %p3153_p12 }
 0x7f4   : > { %p2033_p1 = pneg %p2032_p13 }
 0x7f6   : > { %2406 = dma.done.wait (%p2033_p1), %s1594_s27, 128  }
 0x7f7   : > { %2408 = vsyncadd (%p2033_p1), %s1594_s27, 4294967168  ;;  %s40_s2 = sadd.s32 1, %s3150_s7   ;;  %s3154_s27 = sld [smem:[#allocation17_spill]] }
 0x7f8   : > { %p37_p3 = scmp.ge.s32.totalorder %s40_s2, 6   ;;  %s3155_s28 = sld [smem:[#allocation18_spill]] }
 0x7f9   : > { %s3156_s29 = sld [smem:[#allocation31_spill]] }
 0x7fa   : > { %s3157_s30 = sld [smem:[#allocation20_spill]] }
 0x7fb   : > { %s3158_s0 = sld [smem:[#allocation21_spill]] }
 0x7fc   : > { %s3159_s19 = sld [smem:[#allocation32_spill]]  ;;  %39 = sbr.rel (!%p37_p3) target bundleno = 33 (0x21), region = 228 }
 0x7fd   : > { %s3160_s1 = sld [smem:[#allocation24_spill]] }
 0x7fe   : > { %s3161_s20 = sld [smem:[#allocation25_spill]] }
 0x7ff   : > { %s3162_s21 = sld [smem:[#allocation29_spill]] }
 0x800   : > { %s3163_s22 = sld [smem:[#allocation30_spill]] }
 0x801   :  { %1600 = vsyncpa [#allocation3], 1 }
 0x802   :  { %1602 = vsyncpa [#allocation3 + $0x1], 1 }
 0x803   :  { %1603 = vsyncpa [#allocation6], 1 }
 0x804   :  { %1605 = vsyncpa [#allocation6 + $0x1], 1 }
 0x805   :  { %1606 = vsyncpa [#allocation9], 1 }
 0x806   :  { %1608 = vsyncpa [#allocation9 + $0x1], 1 }
 0x807   :  { %1609 = vsyncpa [#allocation4], 1 }
 0x808   :  { %1611 = vsyncpa [#allocation4 + $0x1], 1 }

</bundles_post_ra>
